<compile_context>
chip_gen: v5e
topology: v5e:2x2
jax: 0.10.0
libtpu: 0.0.40
codegen_flags: <defaults>
</compile_context>

<pallas_src>
import jax
import jax.numpy as jnp
from jax.experimental import pallas as pl
from jax.experimental.pallas import tpu as pltpu

INPUT_SIZE = 784
HIDDEN = 50
NUM_CLASSES = 10

HIDDEN_PAD = 128   # lane-pad 50 -> 128 (zero columns contribute nothing)
OUT_PAD = 128      # lane-pad 10 -> 128 (sliced back to 10 in the wrapper)


def mlp_kernel(x_ref, w1_ref, b1_ref, w2_ref, b2_ref, o_ref):
    # fc1: bf16 operands, f32 accumulation on the MXU.
    h = jnp.dot(x_ref[...], w1_ref[...], preferred_element_type=jnp.float32)
    # Bias + ReLU in f32 on the VPU (safe on v5e, which has no bf16 VPU).
    h = jnp.maximum(h + b1_ref[...], 0.0)
    # fc2: cast activations to bf16 for the MXU, accumulate in f32.
    o = jnp.dot(h.astype(w2_ref.dtype), w2_ref[...],
                preferred_element_type=jnp.float32)
    o_ref[...] = (o + b2_ref[...]).astype(o_ref.dtype)


def _round_up(x, m):
    return (x + m - 1) // m * m


def mlp_forward(x, w1, b1, w2, b2, *, batch_tile=256):
    """y = relu(x @ w1 + b1) @ w2 + b2  (w1: (784,50), w2: (50,10), b*: (1,*))."""
    B = x.shape[0]
    # Batch tile: up to `batch_tile` rows per grid step, multiple of 8 (sublane).
    TB = min(batch_tile, _round_up(B, 8))
    B_pad = _round_up(B, TB)

    # Zero-pad to lane-dense shapes; cast matmul operands to bf16 (f32 accumulate
    # inside the kernel keeps the semantics of the f32 PyTorch forward).
    x_p = jnp.zeros((B_pad, INPUT_SIZE), jnp.bfloat16).at[:B].set(
        x.astype(jnp.bfloat16))
    w1_p = jnp.zeros((INPUT_SIZE, HIDDEN_PAD), jnp.bfloat16).at[:, :HIDDEN].set(
        w1.astype(jnp.bfloat16))
    b1_p = jnp.zeros((1, HIDDEN_PAD), jnp.float32).at[:, :HIDDEN].set(b1)
    w2_p = jnp.zeros((HIDDEN_PAD, OUT_PAD), jnp.bfloat16).at[:HIDDEN, :NUM_CLASSES].set(
        w2.astype(jnp.bfloat16))
    b2_p = jnp.zeros((1, OUT_PAD), jnp.float32).at[:, :NUM_CLASSES].set(b2)

    grid = (B_pad // TB,)
    cost = pl.CostEstimate(
        flops=2 * B_pad * INPUT_SIZE * HIDDEN_PAD
              + 2 * B_pad * HIDDEN_PAD * OUT_PAD,
        transcendentals=0,
        bytes_accessed=(2 * B_pad * INPUT_SIZE          # x (bf16)
                        + 2 * INPUT_SIZE * HIDDEN_PAD   # w1 (bf16)
                        + 2 * HIDDEN_PAD * OUT_PAD      # w2 (bf16)
                        + 4 * (HIDDEN_PAD + OUT_PAD)    # biases (f32)
                        + 4 * B_pad * OUT_PAD),         # output (f32)
    )

    out_padded = pl.pallas_call(
        mlp_kernel,
        out_shape=jax.ShapeDtypeStruct((B_pad, OUT_PAD), jnp.float32),
        grid=grid,
        in_specs=[
            # x: tiled over the batch axis, double-buffered by BlockSpec.
            pl.BlockSpec((TB, INPUT_SIZE), lambda i: (i, 0)),
            # Weights / biases: full resident blocks (same block every step).
            pl.BlockSpec((INPUT_SIZE, HIDDEN_PAD), lambda i: (0, 0)),
            pl.BlockSpec((1, HIDDEN_PAD), lambda i: (0, 0)),
            pl.BlockSpec((HIDDEN_PAD, OUT_PAD), lambda i: (0, 0)),
            pl.BlockSpec((1, OUT_PAD), lambda i: (0, 0)),
        ],
        out_specs=pl.BlockSpec((TB, OUT_PAD), lambda i: (i, 0)),
        compiler_params=pltpu.CompilerParams(
            dimension_semantics=("parallel",)),  # shards batch steps on v7x (2 TCs)
        cost_estimate=cost,
    )(x_p, w1_p, b1_p, w2_p, b2_p)

    # Slice away batch + lane padding.
    return out_padded[:B, :NUM_CLASSES]


def init_params(key):
    # Deterministic init mimicking PyTorch nn.Linear default:
    # U(-1/sqrt(fan_in), 1/sqrt(fan_in)) for weights and biases.
    k1, k2, k3, k4 = jax.random.split(key, 4)
    bound1 = 1.0 / jnp.sqrt(INPUT_SIZE)
    bound2 = 1.0 / jnp.sqrt(HIDDEN)
    w1 = jax.random.uniform(k1, (INPUT_SIZE, HIDDEN), jnp.float32, -bound1, bound1)
    b1 = jax.random.uniform(k2, (1, HIDDEN), jnp.float32, -bound1, bound1)
    w2 = jax.random.uniform(k3, (HIDDEN, NUM_CLASSES), jnp.float32, -bound2, bound2)
    b2 = jax.random.uniform(k4, (1, NUM_CLASSES), jnp.float32, -bound2, bound2)
    return w1, b1, w2, b2


def ref_forward_bf16(x, w1, b1, w2, b2):
    # Pure-JAX reference matching the kernel's numerics (bf16 operands, f32 math).
    xf = x.astype(jnp.bfloat16).astype(jnp.float32)
    w1f = w1.astype(jnp.bfloat16).astype(jnp.float32)
    w2f = w2.astype(jnp.bfloat16).astype(jnp.float32)
    h = jnp.maximum(xf @ w1f + b1, 0.0)
    return h.astype(jnp.bfloat16).astype(jnp.float32) @ w2f + b2


if __name__ == "__main__":
    key = jax.random.PRNGKey(0)
    kx, kp = jax.random.split(key)
    w1, b1, w2, b2 = init_params(kp)

    for B in (512, 8):  # multi-step grid (512/256) and padded small-batch case
        x = jax.random.normal(jax.random.fold_in(kx, B), (B, INPUT_SIZE),
                              dtype=jnp.float32)
        out = mlp_forward(x, w1, b1, w2, b2, batch_tile=256)
        out = jax.block_until_ready(out)
        assert out.shape == (B, NUM_CLASSES)

        # Exact-semantics check against a bf16-operand / f32-accumulate reference.
        ref = ref_forward_bf16(x, w1, b1, w2, b2)
        assert jnp.allclose(out, ref, atol=1e-3, rtol=1e-2), (
            f"mismatch vs bf16 reference at B={B}")

        # Sanity check vs the full-f32 PyTorch semantics (loose tol for bf16 quant).
        ref_f32 = jnp.maximum(x @ w1 + b1, 0.0) @ w2 + b2
        assert jnp.allclose(out, ref_f32, atol=5e-2, rtol=5e-2), (
            f"mismatch vs f32 reference at B={B}")

    print("KERNEL_OK")
</pallas_src>

<mosaic_0001>
module attributes {stable_mosaic.version = 11 : i64} {
  func.func @mlp_kernel(%arg0: i32, %arg1: memref<256x784xbf16, #tpu.memory_space<vmem>>, %arg2: memref<784x128xbf16, #tpu.memory_space<vmem>>, %arg3: memref<1x128xf32, #tpu.memory_space<vmem>>, %arg4: memref<128x128xbf16, #tpu.memory_space<vmem>>, %arg5: memref<1x128xf32, #tpu.memory_space<vmem>>, %arg6: memref<256x128xf32, #tpu.memory_space<vmem>>) attributes {dimension_semantics = [#tpu.dimension_semantics<parallel>], iteration_bounds = array<i64: 2>, scalar_prefetch = 0 : i64, scratch_operands = 0 : i64, tpu.core_type = #tpu.core_type<tc>, window_params = [{transform_indices = @transform_0, window_bounds = array<i64: 256, 784>}, {pipeline_mode = #tpu.pipeline_mode<synchronous>, transform_indices = @transform_1, window_bounds = array<i64: 784, 128>}, {pipeline_mode = #tpu.pipeline_mode<synchronous>, transform_indices = @transform_2, window_bounds = array<i64: 1, 128>}, {pipeline_mode = #tpu.pipeline_mode<synchronous>, transform_indices = @transform_3, window_bounds = array<i64: 128, 128>}, {pipeline_mode = #tpu.pipeline_mode<synchronous>, transform_indices = @transform_4, window_bounds = array<i64: 1, 128>}, {transform_indices = @transform_5, window_bounds = array<i64: 256, 128>}]} {
    %c0 = arith.constant 0 : index
    %c0_0 = arith.constant 0 : index
    %0 = vector.load %arg1[%c0, %c0_0] : memref<256x784xbf16, #tpu.memory_space<vmem>>, vector<256x784xbf16>
    %c0_1 = arith.constant 0 : index
    %c0_2 = arith.constant 0 : index
    %1 = vector.load %arg2[%c0_1, %c0_2] : memref<784x128xbf16, #tpu.memory_space<vmem>>, vector<784x128xbf16>
    %cst = arith.constant dense<0.000000e+00> : vector<256x128xf32>
    %2 = tpu.matmul %0, %1, %cst {dimension_numbers = #tpu.dot_dimension_numbers<[1], [0], [0], [1], [0, 0, 1, 1], [], []>} : vector<256x784xbf16>, vector<784x128xbf16>, vector<256x128xf32> -> vector<256x128xf32>
    %c0_3 = arith.constant 0 : index
    %c0_4 = arith.constant 0 : index
    %3 = vector.load %arg3[%c0_3, %c0_4] : memref<1x128xf32, #tpu.memory_space<vmem>>, vector<1x128xf32>
    %4 = vector.broadcast %3 : vector<1x128xf32> to vector<256x128xf32>
    %5 = arith.addf %2, %4 : vector<256x128xf32>
    %cst_5 = arith.constant 0.000000e+00 : f32
    %6 = vector.broadcast %cst_5 : f32 to vector<256x128xf32>
    %7 = arith.maximumf %5, %6 : vector<256x128xf32>
    %8 = arith.truncf %7 : vector<256x128xf32> to vector<256x128xbf16>
    %c0_6 = arith.constant 0 : index
    %c0_7 = arith.constant 0 : index
    %9 = vector.load %arg4[%c0_6, %c0_7] : memref<128x128xbf16, #tpu.memory_space<vmem>>, vector<128x128xbf16>
    %cst_8 = arith.constant dense<0.000000e+00> : vector<256x128xf32>
    %10 = tpu.matmul %8, %9, %cst_8 {dimension_numbers = #tpu.dot_dimension_numbers<[1], [0], [0], [1], [0, 0, 1, 1], [], []>} : vector<256x128xbf16>, vector<128x128xbf16>, vector<256x128xf32> -> vector<256x128xf32>
    %c0_9 = arith.constant 0 : index
    %c0_10 = arith.constant 0 : index
    %11 = vector.load %arg5[%c0_9, %c0_10] : memref<1x128xf32, #tpu.memory_space<vmem>>, vector<1x128xf32>
    %12 = vector.broadcast %11 : vector<1x128xf32> to vector<256x128xf32>
    %13 = arith.addf %10, %12 : vector<256x128xf32>
    %c0_11 = arith.constant 0 : index
    %c0_12 = arith.constant 0 : index
    %14 = vector.load %arg6[%c0_11, %c0_12] : memref<256x128xf32, #tpu.memory_space<vmem>>, vector<256x128xf32>
    tpu.vector_store %arg6[%c0_11, %c0_12], %13 {strides = array<i32>} : memref<256x128xf32, #tpu.memory_space<vmem>>, vector<256x128xf32>,
    return
  }
  func.func @transform_0(%arg0: i32) -> (i32, i32) {
    %c0_i32 = arith.constant 0 : i32
    %c0_i32_0 = arith.constant 0 : i32
    return %arg0, %c0_i32 : i32, i32
  }
  func.func @transform_1(%arg0: i32) -> (i32, i32) {
    %c0_i32 = arith.constant 0 : i32
    %c0_i32_0 = arith.constant 0 : i32
    %c0_i32_1 = arith.constant 0 : i32
    return %c0_i32, %c0_i32_0 : i32, i32
  }
  func.func @transform_2(%arg0: i32) -> (i32, i32) {
    %c0_i32 = arith.constant 0 : i32
    %c0_i32_0 = arith.constant 0 : i32
    %c0_i32_1 = arith.constant 0 : i32
    return %c0_i32, %c0_i32_0 : i32, i32
  }
  func.func @transform_3(%arg0: i32) -> (i32, i32) {
    %c0_i32 = arith.constant 0 : i32
    %c0_i32_0 = arith.constant 0 : i32
    %c0_i32_1 = arith.constant 0 : i32
    return %c0_i32, %c0_i32_0 : i32, i32
  }
  func.func @transform_4(%arg0: i32) -> (i32, i32) {
    %c0_i32 = arith.constant 0 : i32
    %c0_i32_0 = arith.constant 0 : i32
    %c0_i32_1 = arith.constant 0 : i32
    return %c0_i32, %c0_i32_0 : i32, i32
  }
  func.func @transform_5(%arg0: i32) -> (i32, i32) {
    %c0_i32 = arith.constant 0 : i32
    %c0_i32_0 = arith.constant 0 : i32
    return %arg0, %c0_i32 : i32, i32
  }
}

</mosaic_0001>

<bundles_post_ra>
// kernel: tpu_custom_call.1
= control target key start
LH: loop header
LB: loop body
LE: loop exit
PB: predicated region body
PF: predicated region fallthrough
CT: control target
= control target key end

     0   :  { %10 = vsyncpa [#allocation3], 0  ;;  %s4057_s0 = inlined_call_operand.vmem [shape: bf16[512,784], index: 0, kind: input, shape index: {}]   ;;  %s4058_s1 = inlined_call_operand.vmem [shape: bf16[784,128], index: 1, kind: input, shape index: {}]   ;;  %s4059_s2 = inlined_call_operand.vmem [shape: f32[1,128], index: 2, kind: input, shape index: {}]   ;;  %s4060_s3 = inlined_call_operand.vmem [shape: bf16[128,128], index: 3, kind: input, shape index: {}]   ;;  %s4061_s4 = inlined_call_operand.vmem [shape: f32[1,128], index: 4, kind: input, shape index: {}]   ;;  %s4062_s5 = inlined_call_operand.hbm [shape: f32[512,128], index: 5, kind: output, shape index: {}]  }
   0x1   :  { %12 = vsyncpa [#allocation3 + $0x1], 0  ;;  %s3315_s18 = smov 0   ;;  %s3317_s19 = smov 0  }
   0x2   :  { %s3319_s20 = smov 0   ;;  %s3321_s21 = smov 0  }
   0x3 LB: > { %s3336_s22 = sadd.s32 4294967295, %s3281_s21   ;;  %s2301_s23 = sadd.s32 4294967294, %s3281_s21   ;;  %s3281_s21 = sphi %s3321_s21, %s4068_s21   ;;  %s3277_s20 = sphi %s3319_s20, %s4067_s20   ;;  %s3273_s19 = sphi %s3317_s19, %s4066_s19   ;;  %s3269_s18 = sphi %s3315_s18, %s4065_s18  }
   0x4   : > { %s3340_s24 = sadd.s32 1, %s3281_s21   ;;  %s135_s25 = sadd.s32 1, %s3277_s20 }
   0x5   : > { %s132_s26 = ssub.s32 %s3281_s21, %s3340_s24  ;;  %p145_p0 = scmp.ne.s32.totalorder %s3277_s20, %s3273_s19 }
   0x6   : > { %p133_p1 = scmp.eq.s32.totalorder %s132_s26, 0  ;;  %p146_p2 = scmp.eq.s32.totalorder %s3336_s22, 1 }
   0x7   : > { %p151_p3 = scmp.ne.s32.totalorder %s3273_s19, %s3269_s18  ;;  %p152_p4 = scmp.eq.s32.totalorder %s2301_s23, 1 }
   0x8   : > { %s3351_s27 = scalar_select %p133_p1, %s3277_s20, %s135_s25  }
   0x9   : > { %p3353_p5 = por %p146_p2, %p145_p0  ;;  %p3357_p6 = por %p152_p4, %p151_p3 }
   0xa   : > { %p2304_p7 = scmp.ge.s32.totalorder %s3281_s21, 1  ;;  %p192_p8 = scmp.lt.s32.totalorder %s3281_s21, 3 }
   0xc   : > { %p193_p9 = pnand %p2304_p7, %p192_p8 }
   0xd   : > { %s2306_s13 = sshll.u32 (!%p193_p9), %s3336_s22, 5  ;;  %s3174_s7 = sshll.u32 (!%p193_p9), %s3336_s22, 8 }
   0xe   : > { %196 = sbr.rel (%p193_p9) target bundleno = 841 (0x349), region = 40  ;;  %p222_p10 = scmp.lt.s32.totalorder (!%p193_p9), %s2306_s13, 63 }
   0xf   : > { %s2235_s10 = scalar_lea.hbm (!%p193_p9), %s4062_s5, %s3174_s7  ;;  %s3239_s23 = scalar_lea.hbm (!%p193_p9), %s4062_s5, 512 }
  0x13   : > { %v3124_v0 = vld [vmem:[%s4058_s1 + $0x38] sm:$0xff]  ;;  %v3123_v4 = vld [vmem:[%s4058_s1 + $0x30] sm:$0xff]  ;;  %v3122_v8 = vld [vmem:[%s4058_s1 + $0x28] sm:$0xff]  ;;  %s4070_s13 = smov (!%p222_p10, %s2306_s13), 63  ;;  %vm1314_vm0 = vcmask 130048  }
  0x14   : > { %v3132_v1 = vld [vmem:[%s4058_s1 + $0x78] sm:$0xff]  ;;  %1363 = vmatpush.bf16.msra.mxu0 %v3124_v0  ;;  %v3131_v5 = vld [vmem:[%s4058_s1 + $0x70] sm:$0xff]  ;;  %v3130_v9 = vld [vmem:[%s4058_s1 + $0x68] sm:$0xff]  ;;  %s3175_s25 = smul.u32 28, %s4070_s13  ;;  %s2238_s13 = sshll.u32 %s2235_s10, 4  ;;  %s2239_s13 = int_to_ptr.hbm [resolvable:$true] %s2238_s13 }
  0x15   : > { %v3140_v2 = vld [vmem:[%s4058_s1 + $0xb8] sm:$0xff]  ;;  %1452 = vmatpush.bf16.msra.mxu1 %v3132_v1  ;;  %v3139_v6 = vld [vmem:[%s4058_s1 + $0xb0] sm:$0xff]  ;;  %v3138_v10 = vld [vmem:[%s4058_s1 + $0xa8] sm:$0xff]  ;;  %s3233_s22 = sshra.s32 %s2239_s13, 4  ;;  %s3234_s22 = int_to_ptr.hbm [resolvable:$true] %s3233_s22 }
  0x16   : > { %v3148_v3 = vld [vmem:[%s4058_s1 + $0xf8] sm:$0xff]  ;;  %1541 = vmatpush.bf16.msra.mxu2 %v3140_v2  ;;  %v3147_v7 = vld [vmem:[%s4058_s1 + $0xf0] sm:$0xff]  ;;  %v3146_v11 = vld [vmem:[%s4058_s1 + $0xe8] sm:$0xff]  ;;  %s3445_s14 = scalar_lea.vmem %s4057_s0, %s3175_s25  ;;  %s3235_s15 = scalar_lea.hbm %s3234_s22, 256 }
  0x17   : > { %1630 = vmatpush.bf16.msra.mxu3 %v3148_v3  ;;  %v3121_v12 = vld [vmem:[%s4058_s1 + $0x20] sm:$0xff]  ;;  %v3120_v16 = vld [vmem:[%s4058_s1 + $0x18] sm:$0xff]  ;;  %v3119_v20 = vld [vmem:[%s4058_s1 + $0x10] sm:$0xff]  ;;  %p3236_p11 = scmp.ne.s32.totalorder %s3234_s22, %s3235_s15  ;;  %p3240_p0 = scmp.lt.s32.totalorder %s3234_s22, %s4062_s5 }
  0x18   : > { %1364 = vmatpush.bf16.msra.mxu0 %v3123_v4  ;;  %v3129_v13 = vld [vmem:[%s4058_s1 + $0x60] sm:$0xff]  ;;  %v3128_v17 = vld [vmem:[%s4058_s1 + $0x58] sm:$0xff]  ;;  %v3127_v21 = vld [vmem:[%s4058_s1 + $0x50] sm:$0xff]  ;;  %p3241_p1 = scmp.lt.s32.totalorder %s3239_s23, %s3235_s15 }
  0x19   : > { %1453 = vmatpush.bf16.msra.mxu1 %v3131_v5  ;;  %v3137_v14 = vld [vmem:[%s4058_s1 + $0xa0] sm:$0xff]  ;;  %v3136_v18 = vld [vmem:[%s4058_s1 + $0x98] sm:$0xff]  ;;  %v3135_v22 = vld [vmem:[%s4058_s1 + $0x90] sm:$0xff]  ;;  %p3237_p12 = pnand %p3236_p11, %p3353_p5 }
  0x1a   : > { %1542 = vmatpush.bf16.msra.mxu2 %v3139_v6  ;;  %v3145_v15 = vld [vmem:[%s4058_s1 + $0xe0] sm:$0xff]  ;;  %v3144_v19 = vld [vmem:[%s4058_s1 + $0xd8] sm:$0xff]  ;;  %v3143_v23 = vld [vmem:[%s4058_s1 + $0xd0] sm:$0xff]  ;;  %p3242_p2 = por %p3241_p1, %p3240_p0 }
  0x1b   : > { %1631 = vmatpush.bf16.msra.mxu3 %v3147_v7  ;;  %v3118_v24 = vld [vmem:[%s4058_s1 + $0x8] sm:$0xff]  ;;  %v3117_v28 = vld [vmem:[%s4058_s1] sm:$0xff]  ;;  %v3008_v33 = vld [vmem:[%s3445_s14 + $0x18] sm:$0xf0]  ;;  %p3238_p13 = pneg %p3237_p12 }
  0x1c   : > { %1365 = vmatpush.bf16.msra.mxu0 %v3122_v8  ;;  %v3126_v25 = vld [vmem:[%s4058_s1 + $0x48] sm:$0xff]  ;;  %v3125_v29 = vld [vmem:[%s4058_s1 + $0x40] sm:$0xff]  ;;  %v3156_v41 = vld [vmem:[%s4058_s1 + $0x138] sm:$0xff] }
  0x1d   : > { %1454 = vmatpush.bf16.msra.mxu1 %v3130_v9  ;;  %v3134_v26 = vld [vmem:[%s4058_s1 + $0x88] sm:$0xff]  ;;  %v3133_v30 = vld [vmem:[%s4058_s1 + $0x80] sm:$0xff]  ;;  %v3164_v46 = vld [vmem:[%s4058_s1 + $0x178] sm:$0xff]  ;;  %p3243_p3 = pnand %p3242_p2, %p3238_p13 }
  0x1e   : > { %1543 = vmatpush.bf16.msra.mxu2 %v3138_v10  ;;  %v3142_v27 = vld [vmem:[%s4058_s1 + $0xc8] sm:$0xff]  ;;  %v3141_v31 = vld [vmem:[%s4058_s1 + $0xc0] sm:$0xff]  ;;  %v3155_v47 = vld [vmem:[%s4058_s1 + $0x130] sm:$0xff] }
  0x1f   : > { %1632 = vmatpush.bf16.msra.mxu3 %v3146_v11  ;;  %v2310_v32 = vld [vmem:[%s3445_s14] sm:$0xf]  ;;  %v3005_v34 = vld [vmem:[%s3445_s14 + $0x4] sm:$0xf]  ;;  %v2318_v36 = vld [vmem:[%s3445_s14 + $0x8] sm:$0xf] }
  0x20   : > { %1366 = vmatpush.bf16.msra.mxu0 %v3121_v12  ;;  %v2312_v35 = vld [vmem:[%s3445_s14 + $0x1c] sm:$0xf0]  ;;  %v3009_v37 = vld [vmem:[%s3445_s14 + $0x20] sm:$0xf0]  ;;  %v3006_v38 = vld [vmem:[%s3445_s14 + $0xc] sm:$0xf]  ;;  %v2311_v42 = vor.u32 %v3008_v33, %v2310_v32 }
  0x21   : > { %1455 = vmatpush.bf16.msra.mxu1 %v3129_v13  ;;  %v2320_v39 = vld [vmem:[%s3445_s14 + $0x24] sm:$0xf0]  ;;  %v3165_v40 = vld [vmem:[%s4058_s1 + $0x180] sm:$0xff]  ;;  %v2315_v43 = vor.u32 %v3005_v34, %v2312_v35  ;;  %v2319_v44 = vor.u32 %v3009_v37, %v2318_v36  ;;  %v3163_v48 = vld [vmem:[%s4058_s1 + $0x170] sm:$0xff] }
  0x22   : > { %1544 = vmatpush.bf16.msra.mxu2 %v3137_v14  ;;  %v2323_v45 = vor.u32 %v3006_v38, %v2320_v39  ;;  %v2338_v49 = vld [vmem:[%s3445_s14 + $0x38] sm:$0xf]  ;;  %v3015_v50 = vld [vmem:[%s3445_s14 + $0x50] sm:$0xf0]  ;;  %v3012_v51 = vld [vmem:[%s3445_s14 + $0x3c] sm:$0xf] }
  0x23   : > { %1633 = vmatpush.bf16.msra.mxu3 %v3145_v15  ;;  %v2340_v52 = vld [vmem:[%s3445_s14 + $0x54] sm:$0xf0]  ;;  %v2346_v53 = vld [vmem:[%s3445_s14 + $0x40] sm:$0xf]  ;;  %v3016_v54 = vld [vmem:[%s3445_s14 + $0x58] sm:$0xf0]  ;;  %v2339_v57 = vor.u32 %v3015_v50, %v2338_v49 }
  0x24   : > { %1367 = vmatpush.bf16.msra.mxu0 %v3120_v16  ;;  %v3013_v55 = vld [vmem:[%s3445_s14 + $0x44] sm:$0xf]  ;;  %v2348_v56 = vld [vmem:[%s3445_s14 + $0x5c] sm:$0xf0]  ;;  %v2343_v58 = vor.u32 %v3012_v51, %v2340_v52  ;;  %v2347_v59 = vor.u32 %v3016_v54, %v2346_v53  ;;  %v2366_v61 = vld [vmem:[%s3445_s14 + $0x70] sm:$0xf] }
  0x25   : > { %1456 = vmatpush.bf16.msra.mxu1 %v3128_v17  ;;  %v2351_v60 = vor.u32 %v3013_v55, %v2348_v56  ;;  %v3022_v62 = vld [vmem:[%s3445_s14 + $0x88] sm:$0xf0]  ;;  %v3019_v63 = vld [vmem:[%s3445_s14 + $0x74] sm:$0xf]  ;;  %v2368_v0 = vld [vmem:[%s3445_s14 + $0x8c] sm:$0xf0] }
  0x26   : > { %1545 = vmatpush.bf16.msra.mxu2 %v3136_v18  ;;  %v2374_v1 = vld [vmem:[%s3445_s14 + $0x78] sm:$0xf]  ;;  %v3023_v2 = vld [vmem:[%s3445_s14 + $0x90] sm:$0xf0]  ;;  %v3020_v3 = vld [vmem:[%s3445_s14 + $0x7c] sm:$0xf]  ;;  %v2367_v5 = vor.u32 %v3022_v62, %v2366_v61  ;;  %v2371_v6 = vor.u32 %v3019_v63, %v2368_v0 }
  0x27   : > { %1634 = vmatpush.bf16.msra.mxu3 %v3144_v19  ;;  %v2376_v4 = vld [vmem:[%s3445_s14 + $0x94] sm:$0xf0]  ;;  %v2375_v7 = vor.u32 %v3023_v2, %v2374_v1  ;;  %v3154_v9 = vld [vmem:[%s4058_s1 + $0x128] sm:$0xff]  ;;  %v3029_v12 = vld [vmem:[%s3445_s14 + $0xc0] sm:$0xf0] }
  0x28   : > { %1368 = vmatpush.bf16.msra.mxu0 %v3119_v20  ;;  %v2379_v8 = vor.u32 %v3020_v3, %v2376_v4  ;;  %v3162_v10 = vld [vmem:[%s4058_s1 + $0x168] sm:$0xff]  ;;  %v2402_v15 = vld [vmem:[%s3445_s14 + $0xb0] sm:$0xf]  ;;  %v3027_v17 = vld [vmem:[%s3445_s14 + $0xb4] sm:$0xf] }
  0x29   : > { %1457 = vmatpush.bf16.msra.mxu1 %v3127_v21  ;;  %v2394_v11 = vld [vmem:[%s3445_s14 + $0xa8] sm:$0xf]  ;;  %v3026_v13 = vld [vmem:[%s3445_s14 + $0xac] sm:$0xf]  ;;  %v2404_v18 = vld [vmem:[%s3445_s14 + $0xcc] sm:$0xf0] }
  0x2a   : > { %1546 = vmatpush.bf16.msra.mxu2 %v3135_v22  ;;  %v2396_v14 = vld [vmem:[%s3445_s14 + $0xc4] sm:$0xf0]  ;;  %v3030_v16 = vld [vmem:[%s3445_s14 + $0xc8] sm:$0xf0]  ;;  %v2395_v19 = vor.u32 %v3029_v12, %v2394_v11  ;;  %v2407_v22 = vor.u32 %v3027_v17, %v2404_v18  ;;  %v3153_v35 = vld [vmem:[%s4058_s1 + $0x120] sm:$0xff] }
  0x2b   : > { %1635 = vmatpush.bf16.msra.mxu3 %v3143_v23  ;;  %v2399_v20 = vor.u32 %v3026_v13, %v2396_v14  ;;  %v2403_v21 = vor.u32 %v3030_v16, %v2402_v15  ;;  %v2422_v23 = vld [vmem:[%s3445_s14 + $0xe0] sm:$0xf]  ;;  %v2450_v37 = vld [vmem:[%s3445_s14 + $0x118] sm:$0xf]  ;;  %v3043_v38 = vld [vmem:[%s3445_s14 + $0x130] sm:$0xf0] }
  0x2c   : > { %1369 = vmatpush.bf16.msra.mxu0 %v3118_v24  ;;  %v3036_v24 = vld [vmem:[%s3445_s14 + $0xf8] sm:$0xf0]  ;;  %v3161_v36 = vld [vmem:[%s4058_s1 + $0x160] sm:$0xff]  ;;  %v2478_v49 = vld [vmem:[%s3445_s14 + $0x150] sm:$0xf] }
  0x2d   : > { %1458 = vmatpush.bf16.msra.mxu1 %v3126_v25  ;;  %v3033_v25 = vld [vmem:[%s3445_s14 + $0xe4] sm:$0xf]  ;;  %v3040_v39 = vld [vmem:[%s3445_s14 + $0x11c] sm:$0xf]  ;;  %v3050_v50 = vld [vmem:[%s3445_s14 + $0x168] sm:$0xf0] }
  0x2e   : > { %1547 = vmatpush.bf16.msra.mxu2 %v3134_v26  ;;  %v2424_v26 = vld [vmem:[%s3445_s14 + $0xfc] sm:$0xf0]  ;;  %v3047_v51 = vld [vmem:[%s3445_s14 + $0x154] sm:$0xf]  ;;  %v2480_v52 = vld [vmem:[%s3445_s14 + $0x16c] sm:$0xf0] }
  0x2f   : > { %1636 = vmatpush.bf16.msra.mxu3 %v3142_v27  ;;  %v2430_v27 = vld [vmem:[%s3445_s14 + $0xe8] sm:$0xf]  ;;  %v2427_v32 = vor.u32 %v3033_v25, %v2424_v26  ;;  %v2486_v53 = vld [vmem:[%s3445_s14 + $0x158] sm:$0xf]  ;;  %v3051_v54 = vld [vmem:[%s3445_s14 + $0x170] sm:$0xf0] }
  0x30   : > { %1370 = vmatpush.bf16.msra.mxu0 %v3117_v28  ;;  %v3037_v28 = vld [vmem:[%s3445_s14 + $0x100] sm:$0xf0]  ;;  %v3048_v55 = vld [vmem:[%s3445_s14 + $0x15c] sm:$0xf]  ;;  %v2488_v56 = vld [vmem:[%s3445_s14 + $0x174] sm:$0xf0] }
  0x31   : > { %1459 = vmatpush.bf16.msra.mxu1 %v3125_v29  ;;  %v3034_v29 = vld [vmem:[%s3445_s14 + $0xec] sm:$0xf]  ;;  %v2431_v33 = vor.u32 %v3037_v28, %v2430_v27  ;;  %v3152_v61 = vld [vmem:[%s4058_s1 + $0x118] sm:$0xff]  ;;  %v2506_v63 = vld [vmem:[%s3445_s14 + $0x188] sm:$0xf] }
  0x32   : > { %1548 = vmatpush.bf16.msra.mxu2 %v3133_v30  ;;  %v2432_v30 = vld [vmem:[%s3445_s14 + $0x104] sm:$0xf0]  ;;  %v3160_v62 = vld [vmem:[%s4058_s1 + $0x158] sm:$0xff]  ;;  %v3057_v0 = vld [vmem:[%s3445_s14 + $0x1a0] sm:$0xf0] }
  0x33   : > { %1637 = vmatpush.bf16.msra.mxu3 %v3141_v31  ;;  %1371 = vmatmul.bf16.vlgmr.msra.gmra.mxu0 %v2311_v42  ;;  %v2423_v31 = vor.u32 %v3036_v24, %v2422_v23  ;;  %v2435_v34 = vor.u32 %v3034_v29, %v2432_v30  ;;  %v3044_v42 = vld [vmem:[%s3445_s14 + $0x138] sm:$0xf0]  ;;  %v3054_v1 = vld [vmem:[%s3445_s14 + $0x18c] sm:$0xf]  ;;  %v2508_v2 = vld [vmem:[%s3445_s14 + $0x1a4] sm:$0xf0] }
  0x34   : > { %1719 = vmatpush.bf16.msrb.mxu0 %v3156_v41  ;;  %1460 = vmatmul.bf16.vlgmr.msra.gmra.mxu1 %v2315_v43  ;;  %v2458_v41 = vld [vmem:[%s3445_s14 + $0x120] sm:$0xf]  ;;  %v3041_v43 = vld [vmem:[%s3445_s14 + $0x124] sm:$0xf]  ;;  %v2514_v3 = vld [vmem:[%s3445_s14 + $0x190] sm:$0xf] }
  0x35   : > { %1549 = vmatmul.bf16.vlgmr.msra.gmra.mxu2 %v2319_v44  ;;  %1808 = vmatpush.bf16.msrb.mxu1 %v3164_v46  ;;  %v2460_v44 = vld [vmem:[%s3445_s14 + $0x13c] sm:$0xf0]  ;;  %v3058_v4 = vld [vmem:[%s3445_s14 + $0x1a8] sm:$0xf0]  ;;  %v3173_v11 = vld [vmem:[%s4060_s3 + $0x38] sm:$0xff] }
  0x36   : > { %1904 = vmatpush.bf16.msrb.mxu2 %v3165_v40  ;;  %1638 = vmatmul.bf16.vlgmr.msra.gmra.mxu3 %v2323_v45  ;;  %v2452_v40 = vld [vmem:[%s3445_s14 + $0x134] sm:$0xf0]  ;;  %v2451_v45 = vor.u32 %v3043_v38, %v2450_v37  ;;  %v3568_v12 = vld [vmem:[%s4059_s2] ss:$0 sm:$0xff]  ;;  %v3064_v14 = vld [vmem:[%s3445_s14 + $0x1d8] sm:$0xf0] }
  0x37   : > { %v2455_v46 = vor.u32 %v3040_v39, %v2452_v40  ;;  %2102 = vmatpush.bf16.msrb.mxu3 %v3173_v11  ;;  %v2534_v13 = vld [vmem:[%s3445_s14 + $0x1c0] sm:$0xf]  ;;  %v3061_v15 = vld [vmem:[%s3445_s14 + $0x1c4] sm:$0xf]  ;;  %v2542_v17 = vld [vmem:[%s3445_s14 + $0x1c8] sm:$0xf] }
  0x38   : > { %1720 = vmatpush.bf16.msrb.mxu0 %v3155_v47  ;;  %v2459_v47 = vor.u32 %v3044_v42, %v2458_v41  ;;  %v2536_v16 = vld [vmem:[%s3445_s14 + $0x1dc] sm:$0xf0]  ;;  %v3065_v18 = vld [vmem:[%s3445_s14 + $0x1e0] sm:$0xf0]  ;;  %v3151_v29 = vld [vmem:[%s4058_s1 + $0x110] sm:$0xff] }
  0x39   : > { %1809 = vmatpush.bf16.msrb.mxu1 %v3163_v48  ;;  %v2463_v48 = vor.u32 %v3041_v43, %v2460_v44  ;;  %v2543_v25 = vor.u32 %v3065_v18, %v2542_v17  ;;  %v2562_v39 = vld [vmem:[%s3445_s14 + $0x1f8] sm:$0xf]  ;;  %v3071_v40 = vld [vmem:[%s3445_s14 + $0x210] sm:$0xf0]  ;;  %v3068_v41 = vld [vmem:[%s3445_s14 + $0x1fc] sm:$0xf] }
  0x3a   : > { %v2564_v42 = vld [vmem:[%s3445_s14 + $0x214] sm:$0xf0]  ;;  %v2570_v43 = vld [vmem:[%s3445_s14 + $0x200] sm:$0xf]  ;;  %v3072_v44 = vld [vmem:[%s3445_s14 + $0x218] sm:$0xf0] }
  0x3b   : > { %v2600_v11 = vld [vmem:[%s3445_s14 + $0x254] sm:$0xf0] }
  0x3c   : > { %1721 = vmatpush.bf16.msrb.mxu0 %v3154_v9  ;;  %v2515_v9 = vor.u32 %v3058_v4, %v2514_v3  ;;  %v2590_v4 = vld [vmem:[%s3445_s14 + $0x230] sm:$0xf] }
  0x3d   : > { %1810 = vmatpush.bf16.msrb.mxu1 %v3162_v10 }
  0x40   : > { %1722 = vmatpush.bf16.msrb.mxu0 %v3153_v35  ;;  %v3159_v35 = vld [vmem:[%s4058_s1 + $0x150] sm:$0xff] }
  0x41   : > { %1811 = vmatpush.bf16.msrb.mxu1 %v3161_v36 }
  0x43   : > { %1376 = vmatmul.bf16.gmra.mxu0 %v2339_v57  ;;  %v2479_v57 = vor.u32 %v3050_v50, %v2478_v49  ;;  %v2563_v49 = vor.u32 %v3071_v40, %v2562_v39  ;;  %v2567_v50 = vor.u32 %v3068_v41, %v2564_v42  ;;  %v2620_v39 = vld [vmem:[%s3445_s14 + $0x284] sm:$0xf0]  ;;  %v2626_v40 = vld [vmem:[%s3445_s14 + $0x270] sm:$0xf]  ;;  %v3086_v41 = vld [vmem:[%s3445_s14 + $0x288] sm:$0xf0] }
  0x44   : > { %1465 = vmatmul.bf16.gmra.mxu1 %v2343_v58  ;;  %v2483_v58 = vor.u32 %v3047_v51, %v2480_v52  ;;  %1723 = vmatpush.bf16.msrb.mxu0 %v3152_v61  ;;  %v3083_v42 = vld [vmem:[%s3445_s14 + $0x274] sm:$0xf] }
  0x45   : > { %1554 = vmatmul.bf16.gmra.mxu2 %v2347_v59  ;;  %v2487_v59 = vor.u32 %v3051_v54, %v2486_v53  ;;  %1812 = vmatpush.bf16.msrb.mxu1 %v3160_v62  ;;  %v2571_v54 = vor.u32 %v3072_v44, %v2570_v43  ;;  %v2628_v43 = vld [vmem:[%s3445_s14 + $0x28c] sm:$0xf0] }
  0x46   : > { %1643 = vmatmul.bf16.gmra.mxu3 %v2351_v60  ;;  %v2491_v60 = vor.u32 %v3048_v55, %v2488_v56 }
  0x48   : > { %1724 = vmatpush.bf16.msrb.mxu0 %v3151_v29 }
  0x49   : > { %1813 = vmatpush.bf16.msrb.mxu1 %v3159_v35  ;;  %v2618_v35 = vld [vmem:[%s3445_s14 + $0x268] sm:$0xf] }
  0x53   : > { %1381 = vmatmul.bf16.gmra.mxu0 %v2367_v5  ;;  %v3055_v5 = vld [vmem:[%s3445_s14 + $0x194] sm:$0xf] }
  0x54   : > { %1470 = vmatmul.bf16.gmra.mxu1 %v2371_v6  ;;  %v2516_v6 = vld [vmem:[%s3445_s14 + $0x1ac] sm:$0xf0] }
  0x55   : > { %1559 = vmatmul.bf16.gmra.mxu2 %v2375_v7  ;;  %v2507_v7 = vor.u32 %v3057_v0, %v2506_v63  ;;  %v2519_v10 = vor.u32 %v3055_v5, %v2516_v6  ;;  %v3078_v5 = vld [vmem:[%s3445_s14 + $0x248] sm:$0xf0]  ;;  %v3075_v6 = vld [vmem:[%s3445_s14 + $0x234] sm:$0xf] }
  0x56   : > { %1648 = vmatmul.bf16.gmra.mxu3 %v2379_v8  ;;  %v2511_v8 = vor.u32 %v3054_v1, %v2508_v2 }
  0x63   : > { %1386 = vmatmul.bf16.gmra.mxu0 %v2395_v19  ;;  %v3062_v19 = vld [vmem:[%s3445_s14 + $0x1cc] sm:$0xf] }
  0x64   : > { %1475 = vmatmul.bf16.gmra.mxu1 %v2399_v20  ;;  %v2544_v20 = vld [vmem:[%s3445_s14 + $0x1e4] sm:$0xf0] }
  0x65   : > { %1564 = vmatmul.bf16.gmra.mxu2 %v2403_v21  ;;  %v2535_v21 = vor.u32 %v3064_v14, %v2534_v13  ;;  %v2547_v26 = vor.u32 %v3062_v19, %v2544_v20 }
  0x66   : > { %1653 = vmatmul.bf16.gmra.mxu3 %v2407_v22  ;;  %v2539_v22 = vor.u32 %v3061_v15, %v2536_v16  ;;  %v2591_v15 = vor.u32 %v3078_v5, %v2590_v4  ;;  %v3092_v4 = vld [vmem:[%s3445_s14 + $0x2b8] sm:$0xf0]  ;;  %v3089_v5 = vld [vmem:[%s3445_s14 + $0x2a4] sm:$0xf] }
  0x73   : > { %1391 = vmatmul.bf16.gmra.mxu0 %v2423_v31 }
  0x74   : > { %1480 = vmatmul.bf16.gmra.mxu1 %v2427_v32 }
  0x75   : > { %1569 = vmatmul.bf16.gmra.mxu2 %v2431_v33 }
  0x76   : > { %1658 = vmatmul.bf16.gmra.mxu3 %v2435_v34 }
  0x83   : > { %1396 = vmatmul.bf16.gmra.mxu0 %v2451_v45  ;;  %v3069_v45 = vld [vmem:[%s3445_s14 + $0x204] sm:$0xf] }
  0x84   : > { %1485 = vmatmul.bf16.gmra.mxu1 %v2455_v46  ;;  %v2572_v46 = vld [vmem:[%s3445_s14 + $0x21c] sm:$0xf0] }
  0x85   : > { %1574 = vmatmul.bf16.gmra.mxu2 %v2459_v47  ;;  %v2575_v55 = vor.u32 %v3069_v45, %v2572_v46 }
  0x86   : > { %1663 = vmatmul.bf16.gmra.mxu3 %v2463_v48 }
  0x93   : > { %1401 = vmatmul.bf16.gmra.mxu0 %v2479_v57 }
  0x94   : > { %1490 = vmatmul.bf16.gmra.mxu1 %v2483_v58 }
  0x95   : > { %1579 = vmatmul.bf16.gmra.mxu2 %v2487_v59  ;;  %v3172_v59 = vld [vmem:[%s4060_s3 + $0x30] sm:$0xff] }
  0x96   : > { %1668 = vmatmul.bf16.gmra.mxu3 %v2491_v60 }
  0x97   : > { %2103 = vmatpush.bf16.msrb.mxu3 %v3172_v59 }
  0xa3   : > { %1406 = vmatmul.bf16.gmra.mxu0 %v2507_v7  ;;  %v2592_v7 = vld [vmem:[%s3445_s14 + $0x24c] sm:$0xf0] }
  0xa4   : > { %1495 = vmatmul.bf16.gmra.mxu1 %v2511_v8  ;;  %v2598_v8 = vld [vmem:[%s3445_s14 + $0x238] sm:$0xf]  ;;  %v2595_v16 = vor.u32 %v3075_v6, %v2592_v7  ;;  %v2648_v6 = vld [vmem:[%s3445_s14 + $0x2bc] sm:$0xf0]  ;;  %v2654_v7 = vld [vmem:[%s3445_s14 + $0x2a8] sm:$0xf] }
  0xa5   : > { %1584 = vmatmul.bf16.gmra.mxu2 %v2515_v9  ;;  %v3079_v9 = vld [vmem:[%s3445_s14 + $0x250] sm:$0xf0] }
  0xa6   : > { %1673 = vmatmul.bf16.gmra.mxu3 %v2519_v10  ;;  %v3076_v10 = vld [vmem:[%s3445_s14 + $0x23c] sm:$0xf]  ;;  %v2599_v20 = vor.u32 %v3079_v9, %v2598_v8  ;;  %v3093_v8 = vld [vmem:[%s3445_s14 + $0x2c0] sm:$0xf0]  ;;  %v3090_v9 = vld [vmem:[%s3445_s14 + $0x2ac] sm:$0xf] }
  0xb0   : > { %v1372_v23 = vpop.f32.mrf.mxu0 }
  0xb1   : > { %v1461_v24 = vpop.f32.mrf.mxu1  ;;  %v1373_v27 = vadd.f32 %v3568_v12, %v1372_v23 }
  0xb3   : > { %v1462_v28 = vadd.f32 %v1461_v24, %v1373_v27  ;;  %1411 = vmatmul.bf16.gmra.mxu0 %v2535_v21  ;;  %v2603_v21 = vor.u32 %v3076_v10, %v2600_v11  ;;  %v2656_v10 = vld [vmem:[%s3445_s14 + $0x2c4] sm:$0xf0] }
  0xb4   : > { %1500 = vmatmul.bf16.gmra.mxu1 %v2539_v22 }
  0xb5   : > { %1589 = vmatmul.bf16.gmra.mxu2 %v2543_v25  ;;  %v3150_v25 = vld [vmem:[%s4058_s1 + $0x108] sm:$0xff] }
  0xb6   : > { %1678 = vmatmul.bf16.gmra.mxu3 %v2547_v26  ;;  %1725 = vmatpush.bf16.msrb.mxu0 %v3150_v25  ;;  %v3149_v25 = vld [vmem:[%s4058_s1 + $0x100] sm:$0xff] }
  0xb8   : > { %v1550_v30 = vpop.f32.mrf.mxu2  ;;  %v1374_v33 = vpop.f32.mrf.mxu0 }
  0xb9   : > { %v1639_v31 = vpop.f32.mrf.mxu3  ;;  %v1551_v32 = vadd.f32 %v1550_v30, %v1462_v28  ;;  %v1463_v34 = vpop.f32.mrf.mxu1  ;;  %v1375_v36 = vadd.f32 %v3568_v12, %v1374_v33 }
  0xba   : > { %1726 = vmatpush.bf16.msrb.mxu0 %v3149_v25 }
  0xbb   : > { %v3586_v37 = vadd.f32 %v1639_v31, %v1551_v32  ;;  %v1464_v38 = vadd.f32 %v1463_v34, %v1375_v36  ;;  %v3158_v31 = vld [vmem:[%s4058_s1 + $0x148] sm:$0xff]  ;;  %v3085_v36 = vld [vmem:[%s3445_s14 + $0x280] sm:$0xf0] }
  0xbc   : > { %1814 = vmatpush.bf16.msrb.mxu1 %v3158_v31  ;;  %v2619_v46 = vor.u32 %v3085_v36, %v2618_v35  ;;  %v3157_v31 = vld [vmem:[%s4058_s1 + $0x140] sm:$0xff]  ;;  %v2674_v36 = vld [vmem:[%s3445_s14 + $0x2d8] sm:$0xf] }
  0xc0   : > { %v1552_v47 = vpop.f32.mrf.mxu2  ;;  %v1377_v52 = vpop.f32.mrf.mxu0  ;;  %1815 = vmatpush.bf16.msrb.mxu1 %v3157_v31 }
  0xc1   : > { %v1641_v48 = vpop.f32.mrf.mxu3  ;;  %v1553_v51 = vadd.f32 %v1552_v47, %v1464_v38  ;;  %v1466_v53 = vpop.f32.mrf.mxu1  ;;  %v1378_v56 = vadd.f32 %v3568_v12, %v1377_v52  ;;  %v3082_v38 = vld [vmem:[%s3445_s14 + $0x26c] sm:$0xf]  ;;  %v2631_v52 = vor.u32 %v3083_v42, %v2628_v43  ;;  %v3100_v42 = vld [vmem:[%s3445_s14 + $0x2f8] sm:$0xf0]  ;;  %v3097_v43 = vld [vmem:[%s3445_s14 + $0x2e4] sm:$0xf] }
  0xc2   : > { %v2623_v47 = vor.u32 %v3082_v38, %v2620_v39  ;;  %v3099_v38 = vld [vmem:[%s3445_s14 + $0x2f0] sm:$0xf0]  ;;  %v3096_v39 = vld [vmem:[%s3445_s14 + $0x2dc] sm:$0xf] }
  0xc3   : > { %v3597_v57 = vadd.f32 %v1641_v48, %v1553_v51  ;;  %v1467_v58 = vadd.f32 %v1466_v53, %v1378_v56  ;;  %1416 = vmatmul.bf16.gmra.mxu0 %v2563_v49  ;;  %v2627_v51 = vor.u32 %v3086_v41, %v2626_v40  ;;  %v3171_v56 = vld [vmem:[%s4060_s3 + $0x28] sm:$0xff]  ;;  %v2676_v40 = vld [vmem:[%s3445_s14 + $0x2f4] sm:$0xf0]  ;;  %v2682_v41 = vld [vmem:[%s3445_s14 + $0x2e0] sm:$0xf] }
  0xc4   : > { %1505 = vmatmul.bf16.gmra.mxu1 %v2567_v50  ;;  %2104 = vmatpush.bf16.msrb.mxu3 %v3171_v56 }
  0xc5   : > { %1594 = vmatmul.bf16.gmra.mxu2 %v2571_v54 }
  0xc6   : > { %1683 = vmatmul.bf16.gmra.mxu3 %v2575_v55 }
  0xc8   : > { %v1555_v60 = vpop.f32.mrf.mxu2  ;;  %v1379_v63 = vpop.f32.mrf.mxu0 }
  0xc9   : > { %v1644_v61 = vpop.f32.mrf.mxu3  ;;  %v1556_v62 = vadd.f32 %v1555_v60, %v1467_v58  ;;  %v1468_v0 = vpop.f32.mrf.mxu1  ;;  %v1380_v1 = vadd.f32 %v3568_v12, %v1379_v63 }
  0xcb   : > { %v3603_v2 = vadd.f32 %v1644_v61, %v1556_v62  ;;  %v1469_v3 = vadd.f32 %v1468_v0, %v1380_v1 }
  0xd0   : > { %v1557_v13 = vpop.f32.mrf.mxu2  ;;  %v1382_v18 = vpop.f32.mrf.mxu0 }
  0xd1   : > { %v1646_v14 = vpop.f32.mrf.mxu3  ;;  %v1558_v17 = vadd.f32 %v1557_v13, %v1469_v3  ;;  %v1471_v19 = vpop.f32.mrf.mxu1  ;;  %v1383_v22 = vadd.f32 %v3568_v12, %v1382_v18  ;;  %v2646_v3 = vld [vmem:[%s3445_s14 + $0x2a0] sm:$0xf] }
  0xd3   : > { %v3614_v23 = vadd.f32 %v1646_v14, %v1558_v17  ;;  %v1472_v24 = vadd.f32 %v1471_v19, %v1383_v22  ;;  %1421 = vmatmul.bf16.gmra.mxu0 %v2591_v15  ;;  %v2647_v14 = vor.u32 %v3092_v4, %v2646_v3  ;;  %v2651_v15 = vor.u32 %v3089_v5, %v2648_v6  ;;  %v2702_v5 = vld [vmem:[%s3445_s14 + $0x310] sm:$0xf]  ;;  %v3106_v6 = vld [vmem:[%s3445_s14 + $0x328] sm:$0xf0] }
  0xd4   : > { %1510 = vmatmul.bf16.gmra.mxu1 %v2595_v16  ;;  %v2655_v19 = vor.u32 %v3093_v8, %v2654_v7  ;;  %v3103_v7 = vld [vmem:[%s3445_s14 + $0x314] sm:$0xf]  ;;  %v2704_v8 = vld [vmem:[%s3445_s14 + $0x32c] sm:$0xf0] }
  0xd5   : > { %1599 = vmatmul.bf16.gmra.mxu2 %v2599_v20  ;;  %v2659_v20 = vor.u32 %v3090_v9, %v2656_v10  ;;  %v2710_v9 = vld [vmem:[%s3445_s14 + $0x318] sm:$0xf]  ;;  %v3107_v10 = vld [vmem:[%s3445_s14 + $0x330] sm:$0xf0] }
  0xd6   : > { %1688 = vmatmul.bf16.gmra.mxu3 %v2603_v21 }
  0xd8   : > { %v1560_v26 = vpop.f32.mrf.mxu2  ;;  %v1384_v29 = vpop.f32.mrf.mxu0 }
  0xd9   : > { %v1649_v27 = vpop.f32.mrf.mxu3  ;;  %v1561_v28 = vadd.f32 %v1560_v26, %v1472_v24  ;;  %v1473_v30 = vpop.f32.mrf.mxu1  ;;  %v1385_v32 = vadd.f32 %v3568_v12, %v1384_v29 }
  0xdb   : > { %v3623_v33 = vadd.f32 %v1649_v27, %v1561_v28  ;;  %v1474_v34 = vadd.f32 %v1473_v30, %v1385_v32 }
  0xe0   : > { %v1562_v44 = vpop.f32.mrf.mxu2  ;;  %v1387_v49 = vpop.f32.mrf.mxu0 }
  0xe1   : > { %v1651_v45 = vpop.f32.mrf.mxu3  ;;  %v1563_v48 = vadd.f32 %v1562_v44, %v1474_v34  ;;  %v1476_v50 = vpop.f32.mrf.mxu1  ;;  %v1388_v53 = vadd.f32 %v3568_v12, %v1387_v49  ;;  %v2684_v44 = vld [vmem:[%s3445_s14 + $0x2fc] sm:$0xf0] }
  0xe3   : > { %v3634_v54 = vadd.f32 %v1651_v45, %v1563_v48  ;;  %v1477_v55 = vadd.f32 %v1476_v50, %v1388_v53  ;;  %1426 = vmatmul.bf16.gmra.mxu0 %v2619_v46  ;;  %v2679_v48 = vor.u32 %v3096_v39, %v2676_v40  ;;  %v2687_v53 = vor.u32 %v3097_v43, %v2684_v44  ;;  %v3113_v39 = vld [vmem:[%s3445_s14 + $0x360] sm:$0xf0]  ;;  %v3110_v40 = vld [vmem:[%s3445_s14 + $0x34c] sm:$0xf]  ;;  %v3111_v44 = vld [vmem:[%s3445_s14 + $0x354] sm:$0xf] }
  0xe4   : > { %1515 = vmatmul.bf16.gmra.mxu1 %v2623_v47  ;;  %v2675_v47 = vor.u32 %v3099_v38, %v2674_v36  ;;  %v2730_v38 = vld [vmem:[%s3445_s14 + $0x348] sm:$0xf]  ;;  %v3114_v43 = vld [vmem:[%s3445_s14 + $0x368] sm:$0xf0] }
  0xe5   : > { %1604 = vmatmul.bf16.gmra.mxu2 %v2627_v51 }
  0xe6   : > { %1693 = vmatmul.bf16.gmra.mxu3 %v2631_v52  ;;  %v2683_v52 = vor.u32 %v3100_v42, %v2682_v41  ;;  %v2732_v41 = vld [vmem:[%s3445_s14 + $0x364] sm:$0xf0]  ;;  %v2738_v42 = vld [vmem:[%s3445_s14 + $0x350] sm:$0xf] }
  0xe8   : > { %v1565_v58 = vpop.f32.mrf.mxu2  ;;  %v1389_v61 = vpop.f32.mrf.mxu0 }
  0xe9   : > { %v1654_v59 = vpop.f32.mrf.mxu3  ;;  %v1566_v60 = vadd.f32 %v1565_v58, %v1477_v55  ;;  %v1478_v62 = vpop.f32.mrf.mxu1  ;;  %v1390_v63 = vadd.f32 %v3568_v12, %v1389_v61  ;;  %v3170_v58 = vld [vmem:[%s4060_s3 + $0x20] sm:$0xff] }
  0xea   : > { %2105 = vmatpush.bf16.msrb.mxu3 %v3170_v58 }
  0xeb   : > { %v3640_v0 = vadd.f32 %v1654_v59, %v1566_v60  ;;  %v1479_v1 = vadd.f32 %v1478_v62, %v1390_v63 }
  0xf0   : > { %v1567_v11 = vpop.f32.mrf.mxu2  ;;  %v1392_v17 = vpop.f32.mrf.mxu0 }
  0xf1   : > { %v1656_v13 = vpop.f32.mrf.mxu3  ;;  %v1568_v16 = vadd.f32 %v1567_v11, %v1479_v1  ;;  %v1481_v18 = vpop.f32.mrf.mxu1  ;;  %v1393_v21 = vadd.f32 %v3568_v12, %v1392_v17  ;;  %v3104_v11 = vld [vmem:[%s3445_s14 + $0x31c] sm:$0xf]  ;;  %v2707_v17 = vor.u32 %v3103_v7, %v2704_v8 }
  0xf3   : > { %v3651_v22 = vadd.f32 %v1656_v13, %v1568_v16  ;;  %v1482_v24 = vadd.f32 %v1481_v18, %v1393_v21  ;;  %1431 = vmatmul.bf16.gmra.mxu0 %v2647_v14  ;;  %v2712_v13 = vld [vmem:[%s3445_s14 + $0x334] sm:$0xf0]  ;;  %v2703_v16 = vor.u32 %v3106_v6, %v2702_v5  ;;  %v2711_v21 = vor.u32 %v3107_v10, %v2710_v9  ;;  %v2326_v9 = vld [vmem:[%s3445_s14 + $0x10] sm:$0xf]  ;;  %v3010_v10 = vld [vmem:[%s3445_s14 + $0x28] sm:$0xf0] }
  0xf4   : > { %1520 = vmatmul.bf16.gmra.mxu1 %v2651_v15 }
  0xf5   : > { %1609 = vmatmul.bf16.gmra.mxu2 %v2655_v19 }
  0xf6   : > { %1698 = vmatmul.bf16.gmra.mxu3 %v2659_v20 }
  0xf8   : > { %v1570_v26 = vpop.f32.mrf.mxu2  ;;  %v1394_v29 = vpop.f32.mrf.mxu0 }
  0xf9   : > { %v1659_v27 = vpop.f32.mrf.mxu3  ;;  %v1571_v28 = vadd.f32 %v1570_v26, %v1482_v24  ;;  %v1483_v30 = vpop.f32.mrf.mxu1  ;;  %v1395_v32 = vadd.f32 %v3568_v12, %v1394_v29  ;;  %v2715_v24 = vor.u32 %v3104_v11, %v2712_v13  ;;  %v3007_v11 = vld [vmem:[%s3445_s14 + $0x14] sm:$0xf]  ;;  %v2328_v13 = vld [vmem:[%s3445_s14 + $0x2c] sm:$0xf0] }
  0xfb   : > { %v3660_v34 = vadd.f32 %v1659_v27, %v1571_v28  ;;  %v1484_v35 = vadd.f32 %v1483_v30, %v1395_v32 }
 0x100   : > { %v1572_v45 = vpop.f32.mrf.mxu2  ;;  %v1397_v50 = vpop.f32.mrf.mxu0 }
 0x101   : > { %v3670_v46 = vpop.f32.mrf.mxu3  ;;  %v3672_v49 = vadd.f32 %v1572_v45, %v1484_v35  ;;  %v1486_v51 = vpop.f32.mrf.mxu1  ;;  %v1398_v55 = vadd.f32 %v3568_v12, %v1397_v50  ;;  %v2740_v45 = vld [vmem:[%s3445_s14 + $0x36c] sm:$0xf0]  ;;  %v2731_v50 = vor.u32 %v3113_v39, %v2730_v38 }
 0x102   : > { %v2743_v58 = vor.u32 %v3111_v44, %v2740_v45  ;;  %v3014_v44 = vld [vmem:[%s3445_s14 + $0x4c] sm:$0xf]  ;;  %v2356_v45 = vld [vmem:[%s3445_s14 + $0x64] sm:$0xf0] }
 0x103   : > { %v1487_v56 = vadd.f32 %v1486_v51, %v1398_v55  ;;  %1436 = vmatmul.bf16.gmra.mxu0 %v2675_v47  ;;  %v2735_v51 = vor.u32 %v3110_v40, %v2732_v41 }
 0x104   : > { %1525 = vmatmul.bf16.gmra.mxu1 %v2679_v48 }
 0x105   : > { %1614 = vmatmul.bf16.gmra.mxu2 %v2683_v52 }
 0x106   : > { %1703 = vmatmul.bf16.gmra.mxu3 %v2687_v53 }
 0x108   : > { %v1575_v59 = vpop.f32.mrf.mxu2  ;;  %v1399_v62 = vpop.f32.mrf.mxu0 }
 0x109   : > { %v1664_v60 = vpop.f32.mrf.mxu3  ;;  %v1576_v61 = vadd.f32 %v1575_v59, %v1487_v56  ;;  %v1488_v63 = vpop.f32.mrf.mxu1  ;;  %v1400_v1 = vadd.f32 %v3568_v12, %v1399_v62  ;;  %v2739_v56 = vor.u32 %v3114_v43, %v2738_v42  ;;  %v2354_v42 = vld [vmem:[%s3445_s14 + $0x48] sm:$0xf]  ;;  %v3017_v43 = vld [vmem:[%s3445_s14 + $0x60] sm:$0xf0] }
 0x10b   : > { %v3679_v3 = vadd.f32 %v1664_v60, %v1576_v61  ;;  %v1489_v4 = vadd.f32 %v1488_v63, %v1400_v1  ;;  %v3169_v61 = vld [vmem:[%s4060_s3 + $0x18] sm:$0xff] }
 0x10c   : > { %2106 = vmatpush.bf16.msrb.mxu3 %v3169_v61 }
 0x110   : > { %v1577_v14 = vpop.f32.mrf.mxu2  ;;  %v1402_v19 = vpop.f32.mrf.mxu0 }
 0x111   : > { %v3689_v15 = vpop.f32.mrf.mxu3  ;;  %v3691_v18 = vadd.f32 %v1577_v14, %v1489_v4  ;;  %v1491_v20 = vpop.f32.mrf.mxu1  ;;  %v1403_v25 = vadd.f32 %v3568_v12, %v1402_v19  ;;  %v2334_v14 = vld [vmem:[%s3445_s14 + $0x18] sm:$0xf] }
 0x113   : > { %v1492_v26 = vadd.f32 %v1491_v20, %v1403_v25  ;;  %1441 = vmatmul.bf16.gmra.mxu0 %v2703_v16  ;;  %v3011_v16 = vld [vmem:[%s3445_s14 + $0x30] sm:$0xf0]  ;;  %v2327_v20 = vor.u32 %v3010_v10, %v2326_v9 }
 0x114   : > { %1530 = vmatmul.bf16.gmra.mxu1 %v2707_v17 }
 0x115   : > { %1619 = vmatmul.bf16.gmra.mxu2 %v2711_v21  ;;  %v2331_v21 = vor.u32 %v3007_v11, %v2328_v13 }
 0x116   : > { %1708 = vmatmul.bf16.gmra.mxu3 %v2715_v24 }
 0x118   : > { %v1580_v27 = vpop.f32.mrf.mxu2  ;;  %v1404_v30 = vpop.f32.mrf.mxu0 }
 0x119   : > { %v1669_v28 = vpop.f32.mrf.mxu3  ;;  %v1581_v29 = vadd.f32 %v1580_v27, %v1492_v26  ;;  %v1493_v31 = vpop.f32.mrf.mxu1  ;;  %v1405_v32 = vadd.f32 %v3568_v12, %v1404_v30  ;;  %v2335_v27 = vor.u32 %v3011_v16, %v2334_v14  ;;  %v2382_v14 = vld [vmem:[%s3445_s14 + $0x80] sm:$0xf]  ;;  %v3024_v16 = vld [vmem:[%s3445_s14 + $0x98] sm:$0xf0] }
 0x11b   : > { %v3695_v35 = vadd.f32 %v1669_v28, %v1581_v29  ;;  %v1494_v36 = vadd.f32 %v1493_v31, %v1405_v32 }
 0x120   : > { %v1582_v47 = vpop.f32.mrf.mxu2  ;;  %v1407_v53 = vpop.f32.mrf.mxu0 }
 0x121   : > { %v3705_v48 = vpop.f32.mrf.mxu3  ;;  %v3707_v52 = vadd.f32 %v1582_v47, %v1494_v36  ;;  %v1496_v55 = vpop.f32.mrf.mxu1  ;;  %v1408_v59 = vadd.f32 %v3568_v12, %v1407_v53  ;;  %v2362_v47 = vld [vmem:[%s3445_s14 + $0x50] sm:$0xf] }
 0x123   : > { %v1497_v60 = vadd.f32 %v1496_v55, %v1408_v59  ;;  %1446 = vmatmul.bf16.gmra.mxu0 %v2731_v50  ;;  %v3018_v50 = vld [vmem:[%s3445_s14 + $0x68] sm:$0xf0]  ;;  %v2355_v55 = vor.u32 %v3017_v43, %v2354_v42 }
 0x124   : > { %1535 = vmatmul.bf16.gmra.mxu1 %v2735_v51  ;;  %v2363_v61 = vor.u32 %v3018_v50, %v2362_v47 }
 0x125   : > { %1624 = vmatmul.bf16.gmra.mxu2 %v2739_v56  ;;  %v2359_v56 = vor.u32 %v3014_v44, %v2356_v45 }
 0x126   : > { %1713 = vmatmul.bf16.gmra.mxu3 %v2743_v58 }
 0x128   : > { %v1585_v62 = vpop.f32.mrf.mxu2  ;;  %v1409_v4 = vpop.f32.mrf.mxu0 }
 0x129   : > { %v1674_v63 = vpop.f32.mrf.mxu3  ;;  %v1586_v1 = vadd.f32 %v1585_v62, %v1497_v60  ;;  %v1498_v5 = vpop.f32.mrf.mxu1  ;;  %v1410_v6 = vadd.f32 %v3568_v12, %v1409_v4 }
 0x12b   : > { %v3714_v7 = vadd.f32 %v1674_v63, %v1586_v1  ;;  %v1499_v8 = vadd.f32 %v1498_v5, %v1410_v6  ;;  %v3168_v1 = vld [vmem:[%s4060_s3 + $0x10] sm:$0xff] }
 0x12c   : > { %2107 = vmatpush.bf16.msrb.mxu3 %v3168_v1 }
 0x130   : > { %v1587_v17 = vpop.f32.mrf.mxu2  ;;  %v1412_v25 = vpop.f32.mrf.mxu0 }
 0x131   : > { %v3722_v19 = vpop.f32.mrf.mxu3  ;;  %v3724_v24 = vadd.f32 %v1587_v17, %v1499_v8  ;;  %v1501_v26 = vpop.f32.mrf.mxu1  ;;  %v1413_v28 = vadd.f32 %v3568_v12, %v1412_v25  ;;  %v3021_v17 = vld [vmem:[%s3445_s14 + $0x84] sm:$0xf] }
 0x132   : > { %v3025_v25 = vld [vmem:[%s3445_s14 + $0xa0] sm:$0xf0] }
 0x133   : > { %v1502_v29 = vadd.f32 %v1501_v26, %v1413_v28  ;;  %1727 = vmatmul.bf16.vlgmr.msrb.gmra.mxu0 %v2327_v20  ;;  %v2384_v20 = vld [vmem:[%s3445_s14 + $0x9c] sm:$0xf0]  ;;  %v2383_v28 = vor.u32 %v3024_v16, %v2382_v14  ;;  %v3167_v16 = vld [vmem:[%s4060_s3 + $0x8] sm:$0xff] }
 0x134   : > { %1816 = vmatmul.bf16.vlgmr.msrb.gmra.mxu1 %v2331_v21  ;;  %v2390_v21 = vld [vmem:[%s3445_s14 + $0x88] sm:$0xf]  ;;  %2108 = vmatpush.bf16.msrb.mxu3 %v3167_v16  ;;  %v3045_v16 = vld [vmem:[%s3445_s14 + $0x140] sm:$0xf0] }
 0x135   : > { %2952 = vmatmul.msk.bf16.vlgmr.msrb.gmra.mxu2 %vm1314_vm0, %v2335_v27 }
 0x138   : > { %v1590_v30 = vpop.f32.mrf.mxu2  ;;  %v1414_v36 = vpop.f32.mrf.mxu0 }
 0x139   : > { %v1679_v31 = vpop.f32.mrf.mxu3  ;;  %v1591_v32 = vadd.f32 %v1590_v30, %v1502_v29  ;;  %v1503_v38 = vpop.f32.mrf.mxu1  ;;  %v1415_v39 = vadd.f32 %v3568_v12, %v1414_v36  ;;  %v2387_v29 = vor.u32 %v3021_v17, %v2384_v20  ;;  %v2391_v36 = vor.u32 %v3025_v25, %v2390_v21 }
 0x13b   : > { %v3729_v40 = vadd.f32 %v1679_v31, %v1591_v32  ;;  %v1504_v41 = vadd.f32 %v1503_v38, %v1415_v39 }
 0x140   : > { %v1592_v51 = vpop.f32.mrf.mxu2  ;;  %v1417_v59 = vpop.f32.mrf.mxu0 }
 0x141   : > { %v3737_v53 = vpop.f32.mrf.mxu3  ;;  %v3739_v58 = vadd.f32 %v1592_v51, %v1504_v41  ;;  %v1506_v60 = vpop.f32.mrf.mxu1  ;;  %v1418_v62 = vadd.f32 %v3568_v12, %v1417_v59  ;;  %v3028_v59 = vld [vmem:[%s3445_s14 + $0xbc] sm:$0xf] }
 0x143   : > { %v1507_v63 = vadd.f32 %v1506_v60, %v1418_v62  ;;  %1732 = vmatmul.bf16.gmra.mxu0 %v2355_v55  ;;  %v2410_v55 = vld [vmem:[%s3445_s14 + $0xb8] sm:$0xf]  ;;  %v3032_v62 = vld [vmem:[%s3445_s14 + $0xd8] sm:$0xf0] }
 0x144   : > { %1821 = vmatmul.bf16.gmra.mxu1 %v2359_v56  ;;  %v3031_v56 = vld [vmem:[%s3445_s14 + $0xd0] sm:$0xf0]  ;;  %v2412_v60 = vld [vmem:[%s3445_s14 + $0xd4] sm:$0xf0] }
 0x145   : > { %2953 = vmatmul.msk.bf16.gmra.mxu2 %vm1314_vm0, %v2363_v61  ;;  %v2418_v61 = vld [vmem:[%s3445_s14 + $0xc0] sm:$0xf] }
 0x148   : > { %v1595_v4 = vpop.f32.mrf.mxu2  ;;  %v1419_v8 = vpop.f32.mrf.mxu0 }
 0x149   : > { %v1684_v5 = vpop.f32.mrf.mxu3  ;;  %v1596_v6 = vadd.f32 %v1595_v4, %v1507_v63  ;;  %v1508_v9 = vpop.f32.mrf.mxu1  ;;  %v1420_v10 = vadd.f32 %v3568_v12, %v1419_v8  ;;  %v2411_v4 = vor.u32 %v3031_v56, %v2410_v55 }
 0x14b   : > { %v3747_v11 = vadd.f32 %v1684_v5, %v1596_v6  ;;  %v1509_v13 = vadd.f32 %v1508_v9, %v1420_v10  ;;  %v2415_v5 = vor.u32 %v3028_v59, %v2412_v60  ;;  %v2419_v10 = vor.u32 %v3032_v62, %v2418_v61 }
 0x150   : > { %v1597_v26 = vpop.f32.mrf.mxu2  ;;  %v1422_v31 = vpop.f32.mrf.mxu0 }
 0x151   : > { %v3755_v27 = vpop.f32.mrf.mxu3  ;;  %v3757_v30 = vadd.f32 %v1597_v26, %v1509_v13  ;;  %v1511_v32 = vpop.f32.mrf.mxu1  ;;  %v1423_v38 = vadd.f32 %v3568_v12, %v1422_v31 }
 0x153   : > { %v1512_v39 = vadd.f32 %v1511_v32, %v1423_v38  ;;  %1737 = vmatmul.bf16.gmra.mxu0 %v2383_v28  ;;  %v2438_v32 = vld [vmem:[%s3445_s14 + $0xf0] sm:$0xf]  ;;  %v3035_v38 = vld [vmem:[%s3445_s14 + $0xf4] sm:$0xf] }
 0x154   : > { %1826 = vmatmul.bf16.gmra.mxu1 %v2387_v29 }
 0x155   : > { %2954 = vmatmul.msk.bf16.gmra.mxu2 %vm1314_vm0, %v2391_v36  ;;  %v3038_v36 = vld [vmem:[%s3445_s14 + $0x108] sm:$0xf0] }
 0x158   : > { %v1600_v41 = vpop.f32.mrf.mxu2  ;;  %v1424_v44 = vpop.f32.mrf.mxu0 }
 0x159   : > { %v1689_v42 = vpop.f32.mrf.mxu3  ;;  %v1601_v43 = vadd.f32 %v1600_v41, %v1512_v39  ;;  %v1513_v45 = vpop.f32.mrf.mxu1  ;;  %v1425_v47 = vadd.f32 %v3568_v12, %v1424_v44  ;;  %v2440_v39 = vld [vmem:[%s3445_s14 + $0x10c] sm:$0xf0]  ;;  %v2446_v41 = vld [vmem:[%s3445_s14 + $0xf8] sm:$0xf] }
 0x15b   : > { %v3762_v50 = vadd.f32 %v1689_v42, %v1601_v43  ;;  %v1514_v51 = vadd.f32 %v1513_v45, %v1425_v47  ;;  %v3039_v42 = vld [vmem:[%s3445_s14 + $0x110] sm:$0xf0]  ;;  %v2439_v45 = vor.u32 %v3038_v36, %v2438_v32  ;;  %v2443_v47 = vor.u32 %v3035_v38, %v2440_v39 }
 0x15c   : > { %v2447_v59 = vor.u32 %v3039_v42, %v2446_v41 }
 0x160   : > { %v1602_v63 = vpop.f32.mrf.mxu2  ;;  %v1427_v8 = vpop.f32.mrf.mxu0 }
 0x161   : > { %v3770_v1 = vpop.f32.mrf.mxu3  ;;  %v3772_v6 = vadd.f32 %v1602_v63, %v1514_v51  ;;  %v1516_v9 = vpop.f32.mrf.mxu1  ;;  %v1428_v13 = vadd.f32 %v3568_v12, %v1427_v8 }
 0x163   : > { %v1517_v14 = vadd.f32 %v1516_v9, %v1428_v13  ;;  %1742 = vmatmul.bf16.gmra.mxu0 %v2411_v4 }
 0x164   : > { %1831 = vmatmul.bf16.gmra.mxu1 %v2415_v5 }
 0x165   : > { %2955 = vmatmul.msk.bf16.gmra.mxu2 %vm1314_vm0, %v2419_v10 }
 0x168   : > { %v1605_v17 = vpop.f32.mrf.mxu2  ;;  %v1429_v25 = vpop.f32.mrf.mxu0 }
 0x169   : > { %v1694_v20 = vpop.f32.mrf.mxu3  ;;  %v1606_v21 = vadd.f32 %v1605_v17, %v1517_v14  ;;  %v1518_v26 = vpop.f32.mrf.mxu1  ;;  %v1430_v28 = vadd.f32 %v3568_v12, %v1429_v25  ;;  %v2466_v14 = vld [vmem:[%s3445_s14 + $0x128] sm:$0xf]  ;;  %v3042_v17 = vld [vmem:[%s3445_s14 + $0x12c] sm:$0xf] }
 0x16a   : > { %v3046_v25 = vld [vmem:[%s3445_s14 + $0x148] sm:$0xf0] }
 0x16b   : > { %v3780_v29 = vadd.f32 %v1694_v20, %v1606_v21  ;;  %v1519_v31 = vadd.f32 %v1518_v26, %v1430_v28  ;;  %v2468_v20 = vld [vmem:[%s3445_s14 + $0x144] sm:$0xf0]  ;;  %v2474_v21 = vld [vmem:[%s3445_s14 + $0x130] sm:$0xf] }
 0x16c   : > { %v2471_v32 = vor.u32 %v3042_v17, %v2468_v20  ;;  %v2475_v41 = vor.u32 %v3046_v25, %v2474_v21 }
 0x170   : > { %v1607_v43 = vpop.f32.mrf.mxu2  ;;  %v1432_v55 = vpop.f32.mrf.mxu0 }
 0x171   : > { %v3788_v44 = vpop.f32.mrf.mxu3  ;;  %v3790_v51 = vadd.f32 %v1607_v43, %v1519_v31  ;;  %v1521_v56 = vpop.f32.mrf.mxu1  ;;  %v1433_v60 = vadd.f32 %v3568_v12, %v1432_v55  ;;  %v2467_v31 = vor.u32 %v3045_v16, %v2466_v14  ;;  %v3053_v14 = vld [vmem:[%s3445_s14 + $0x180] sm:$0xf0] }
 0x173   : > { %v1522_v61 = vadd.f32 %v1521_v56, %v1433_v60  ;;  %1747 = vmatmul.bf16.gmra.mxu0 %v2439_v45  ;;  %v3166_v45 = vld [vmem:[%s4060_s3] sm:$0xff] }
 0x174   : > { %1836 = vmatmul.bf16.gmra.mxu1 %v2443_v47  ;;  %2109 = vmatpush.bf16.msrb.mxu3 %v3166_v45 }
 0x175   : > { %2956 = vmatmul.msk.bf16.gmra.mxu2 %vm1314_vm0, %v2447_v59 }
 0x178   : > { %v1610_v62 = vpop.f32.mrf.mxu2  ;;  %v1434_v5 = vpop.f32.mrf.mxu0 }
 0x179   : > { %v1699_v63 = vpop.f32.mrf.mxu3  ;;  %v1611_v4 = vadd.f32 %v1610_v62, %v1522_v61  ;;  %v1523_v8 = vpop.f32.mrf.mxu1  ;;  %v1435_v9 = vadd.f32 %v3568_v12, %v1434_v5  ;;  %v3052_v5 = vld [vmem:[%s3445_s14 + $0x178] sm:$0xf0] }
 0x17b   : > { %v3795_v10 = vadd.f32 %v1699_v63, %v1611_v4  ;;  %v1524_v13 = vadd.f32 %v1523_v8, %v1435_v9  ;;  %v2494_v4 = vld [vmem:[%s3445_s14 + $0x160] sm:$0xf]  ;;  %v3049_v8 = vld [vmem:[%s3445_s14 + $0x164] sm:$0xf] }
 0x17c   : > { %v2496_v9 = vld [vmem:[%s3445_s14 + $0x17c] sm:$0xf0]  ;;  %v2495_v20 = vor.u32 %v3052_v5, %v2494_v4  ;;  %v2524_v4 = vld [vmem:[%s3445_s14 + $0x1b4] sm:$0xf0] }
 0x17d   : > { %v2499_v21 = vor.u32 %v3049_v8, %v2496_v9  ;;  %v2530_v5 = vld [vmem:[%s3445_s14 + $0x1a0] sm:$0xf]  ;;  %v3060_v8 = vld [vmem:[%s3445_s14 + $0x1b8] sm:$0xf0] }
 0x180   : > { %v1612_v26 = vpop.f32.mrf.mxu2  ;;  %v1437_v38 = vpop.f32.mrf.mxu0 }
 0x181   : > { %v3803_v28 = vpop.f32.mrf.mxu3  ;;  %v3805_v36 = vadd.f32 %v1612_v26, %v1524_v13  ;;  %v1526_v39 = vpop.f32.mrf.mxu1  ;;  %v1438_v42 = vadd.f32 %v3568_v12, %v1437_v38  ;;  %v2502_v13 = vld [vmem:[%s3445_s14 + $0x168] sm:$0xf] }
 0x183   : > { %v1527_v43 = vadd.f32 %v1526_v39, %v1438_v42  ;;  %1752 = vmatmul.bf16.gmra.mxu0 %v2467_v31 }
 0x184   : > { %1841 = vmatmul.bf16.gmra.mxu1 %v2471_v32  ;;  %v2503_v32 = vor.u32 %v3053_v14, %v2502_v13 }
 0x185   : > { %2957 = vmatmul.msk.bf16.gmra.mxu2 %vm1314_vm0, %v2475_v41 }
 0x188   : > { %v1615_v47 = vpop.f32.mrf.mxu2  ;;  %v1439_v59 = vpop.f32.mrf.mxu0 }
 0x189   : > { %v1704_v55 = vpop.f32.mrf.mxu3  ;;  %v1616_v56 = vadd.f32 %v1615_v47, %v1527_v43  ;;  %v1528_v60 = vpop.f32.mrf.mxu1  ;;  %v1440_v61 = vadd.f32 %v3568_v12, %v1439_v59 }
 0x18b   : > { %v3813_v62 = vadd.f32 %v1704_v55, %v1616_v56  ;;  %v1529_v63 = vadd.f32 %v1528_v60, %v1440_v61  ;;  %v2522_v60 = vld [vmem:[%s3445_s14 + $0x198] sm:$0xf]  ;;  %v3059_v61 = vld [vmem:[%s3445_s14 + $0x1b0] sm:$0xf0] }
 0x18c   : > { %v2523_v14 = vor.u32 %v3059_v61, %v2522_v60  ;;  %v2550_v60 = vld [vmem:[%s3445_s14 + $0x1d0] sm:$0xf]  ;;  %v3066_v61 = vld [vmem:[%s3445_s14 + $0x1e8] sm:$0xf0] }
 0x190   : > { %v1617_v16 = vpop.f32.mrf.mxu2  ;;  %v1442_v26 = vpop.f32.mrf.mxu0 }
 0x191   : > { %v3821_v17 = vpop.f32.mrf.mxu3  ;;  %v3823_v25 = vadd.f32 %v1617_v16, %v1529_v63  ;;  %v1531_v31 = vpop.f32.mrf.mxu1  ;;  %v1443_v38 = vadd.f32 %v3568_v12, %v1442_v26  ;;  %v3056_v63 = vld [vmem:[%s3445_s14 + $0x19c] sm:$0xf] }
 0x192   : > { %v2527_v16 = vor.u32 %v3056_v63, %v2524_v4  ;;  %v3063_v63 = vld [vmem:[%s3445_s14 + $0x1d4] sm:$0xf]  ;;  %v2552_v4 = vld [vmem:[%s3445_s14 + $0x1ec] sm:$0xf0] }
 0x193   : > { %v1532_v39 = vadd.f32 %v1531_v31, %v1443_v38  ;;  %1757 = vmatmul.bf16.gmra.mxu0 %v2495_v20  ;;  %v2531_v31 = vor.u32 %v3060_v8, %v2530_v5  ;;  %v2558_v5 = vld [vmem:[%s3445_s14 + $0x1d8] sm:$0xf]  ;;  %v3067_v8 = vld [vmem:[%s3445_s14 + $0x1f0] sm:$0xf0] }
 0x194   : > { %1846 = vmatmul.bf16.gmra.mxu1 %v2499_v21 }
 0x195   : > { %2958 = vmatmul.msk.bf16.gmra.mxu2 %vm1314_vm0, %v2503_v32 }
 0x198   : > { %v1620_v41 = vpop.f32.mrf.mxu2  ;;  %v1444_v45 = vpop.f32.mrf.mxu0 }
 0x199   : > { %v1709_v42 = vpop.f32.mrf.mxu3  ;;  %v1621_v43 = vadd.f32 %v1620_v41, %v1532_v39  ;;  %v1533_v47 = vpop.f32.mrf.mxu1  ;;  %v1445_v55 = vadd.f32 %v3568_v12, %v1444_v45 }
 0x19b   : > { %v3828_v56 = vadd.f32 %v1709_v42, %v1621_v43  ;;  %v1534_v59 = vadd.f32 %v1533_v47, %v1445_v55 }
 0x1a0   : > { %v1622_v9 = vpop.f32.mrf.mxu2  ;;  %v1447_v21 = vpop.f32.mrf.mxu0 }
 0x1a1   : > { %v3836_v13 = vpop.f32.mrf.mxu3  ;;  %v3838_v20 = vadd.f32 %v1622_v9, %v1534_v59  ;;  %v1536_v26 = vpop.f32.mrf.mxu1  ;;  %v1448_v32 = vadd.f32 %v3568_v12, %v1447_v21 }
 0x1a3   : > { %v1537_v38 = vadd.f32 %v1536_v26, %v1448_v32  ;;  %1762 = vmatmul.bf16.gmra.mxu0 %v2523_v14  ;;  %v2551_v14 = vor.u32 %v3066_v61, %v2550_v60  ;;  %v2580_v60 = vld [vmem:[%s3445_s14 + $0x224] sm:$0xf0]  ;;  %v2586_v61 = vld [vmem:[%s3445_s14 + $0x210] sm:$0xf] }
 0x1a4   : > { %1851 = vmatmul.bf16.gmra.mxu1 %v2527_v16  ;;  %v2555_v16 = vor.u32 %v3063_v63, %v2552_v4  ;;  %v3074_v63 = vld [vmem:[%s3445_s14 + $0x228] sm:$0xf0] }
 0x1a5   : > { %2959 = vmatmul.msk.bf16.gmra.mxu2 %vm1314_vm0, %v2531_v31  ;;  %v2559_v31 = vor.u32 %v3067_v8, %v2558_v5 }
 0x1a8   : > { %v1625_v39 = vpop.f32.mrf.mxu2  ;;  %v1449_v43 = vpop.f32.mrf.mxu0 }
 0x1a9   : > { %v1714_v41 = vpop.f32.mrf.mxu3  ;;  %v1626_v42 = vadd.f32 %v1625_v39, %v1537_v38  ;;  %v1538_v45 = vpop.f32.mrf.mxu1  ;;  %v1450_v47 = vadd.f32 %v3568_v12, %v1449_v43  ;;  %v2578_v43 = vld [vmem:[%s3445_s14 + $0x208] sm:$0xf] }
 0x1ab   : > { %v3843_v55 = vadd.f32 %v1714_v41, %v1626_v42  ;;  %v1539_v59 = vadd.f32 %v1538_v45, %v1450_v47  ;;  %v3073_v47 = vld [vmem:[%s3445_s14 + $0x220] sm:$0xf0] }
 0x1b0   : > { %v1627_v9 = vpop.f32.mrf.mxu2  ;;  %v1728_v26 = vpop.f32.mrf.mxu0 }
 0x1b1   : > { %v3851_v21 = vadd.f32 %v1627_v9, %v1539_v59  ;;  %v1817_v12 = vpop.f32.mrf.mxu1  ;;  %v1729_v38 = vadd.f32 %v1728_v26, %v3586_v37  ;;  %v3070_v59 = vld [vmem:[%s3445_s14 + $0x20c] sm:$0xf]  ;;  %v2579_v9 = vor.u32 %v3073_v47, %v2578_v43  ;;  %v2587_v26 = vor.u32 %v3074_v63, %v2586_v61  ;;  %v2608_v61 = vld [vmem:[%s3445_s14 + $0x25c] sm:$0xf0]  ;;  %v2614_v63 = vld [vmem:[%s3445_s14 + $0x248] sm:$0xf] }
 0x1b3   : > { %1767 = vmatmul.bf16.gmra.mxu0 %v2551_v14  ;;  %v1818_v45 = vadd.f32 %v1817_v12, %v1729_v38  ;;  %v2583_v14 = vor.u32 %v3070_v59, %v2580_v60  ;;  %v3080_v59 = vld [vmem:[%s3445_s14 + $0x258] sm:$0xf0]  ;;  %v3077_v60 = vld [vmem:[%s3445_s14 + $0x244] sm:$0xf] }
 0x1b4   : > { %1856 = vmatmul.bf16.gmra.mxu1 %v2555_v16 }
 0x1b5   : > { %2960 = vmatmul.msk.bf16.gmra.mxu2 %vm1314_vm0, %v2559_v31 }
 0x1b8   : > { %v1906_v32 = vpop.f32.mrf.mxu2  ;;  %v1730_v39 = vpop.f32.mrf.mxu0 }
 0x1b9   : > { %v1819_v41 = vpop.f32.mrf.mxu1  ;;  %v1731_v42 = vadd.f32 %v1730_v39, %v3597_v57  ;;  %v1907_v4 = vadd.f32 %v1906_v32, %v1818_v45  ;;  %v2606_v45 = vld [vmem:[%s3445_s14 + $0x240] sm:$0xf] }
 0x1bb   : > { %v1820_v5 = vadd.f32 %v1819_v41, %v1731_v42  ;;  %v1986_v57 = vmax.f32 %v1907_v4, 0.0  ;;  %v3081_v4 = vld [vmem:[%s3445_s14 + $0x260] sm:$0xf0] }
 0x1c0   : > { %v1908_v8 = vpop.f32.mrf.mxu2  ;;  %v1733_v31 = vpop.f32.mrf.mxu0 }
 0x1c1   : > { %v1909_v16 = vadd.f32 %v1908_v8, %v1820_v5  ;;  %v1822_v37 = vpop.f32.mrf.mxu1  ;;  %v1734_v39 = vadd.f32 %v1733_v31, %v3603_v2  ;;  %v2615_v31 = vor.u32 %v3081_v4, %v2614_v63  ;;  %v3088_v63 = vld [vmem:[%s3445_s14 + $0x298] sm:$0xf0] }
 0x1c3   : > { %v1987_v12 = vmax.f32 %v1909_v16, 0.0  ;;  %1772 = vmatmul.bf16.gmra.mxu0 %v2579_v9  ;;  %v1823_v47 = vadd.f32 %v1822_v37, %v1734_v39  ;;  %v2611_v16 = vor.u32 %v3077_v60, %v2608_v61  ;;  %v2636_v60 = vld [vmem:[%s3445_s14 + $0x294] sm:$0xf0]  ;;  %v2642_v61 = vld [vmem:[%s3445_s14 + $0x280] sm:$0xf] }
 0x1c4   : > { %1861 = vmatmul.bf16.gmra.mxu1 %v2583_v14  ;;  %v2607_v14 = vor.u32 %v3080_v59, %v2606_v45  ;;  %v3084_v59 = vld [vmem:[%s3445_s14 + $0x27c] sm:$0xf] }
 0x1c5   : > { %v2018_v38 = vpack.c.bf16 %v1987_v12, %v1986_v57  ;;  %2961 = vmatmul.msk.bf16.gmra.mxu2 %vm1314_vm0, %v2587_v26 }
 0x1c7   : > { %2110 = vmatmul.bf16.vlgmr.msrb.gmra.mxu3 %v2018_v38 }
 0x1c8   : > { %v1911_v32 = vpop.f32.mrf.mxu2  ;;  %v1735_v41 = vpop.f32.mrf.mxu0 }
 0x1c9   : > { %v1824_v42 = vpop.f32.mrf.mxu1  ;;  %v1736_v43 = vadd.f32 %v1735_v41, %v3614_v23  ;;  %v1912_v5 = vadd.f32 %v1911_v32, %v1823_v47  ;;  %v3087_v47 = vld [vmem:[%s3445_s14 + $0x290] sm:$0xf0] }
 0x1cb   : > { %v1825_v8 = vadd.f32 %v1824_v42, %v1736_v43  ;;  %v1988_v23 = vmax.f32 %v1912_v5, 0.0  ;;  %v2634_v43 = vld [vmem:[%s3445_s14 + $0x278] sm:$0xf] }
 0x1d0   : > { %v1913_v9 = vpop.f32.mrf.mxu2  ;;  %v1738_v57 = vpop.f32.mrf.mxu0 }
 0x1d1   : > { %v1914_v26 = vadd.f32 %v1913_v9, %v1825_v8  ;;  %v1827_v2 = vpop.f32.mrf.mxu1  ;;  %v1739_v32 = vadd.f32 %v1738_v57, %v3623_v33  ;;  %v2635_v9 = vor.u32 %v3087_v47, %v2634_v43  ;;  %v2643_v57 = vor.u32 %v3088_v63, %v2642_v61  ;;  %v3091_v43 = vld [vmem:[%s3445_s14 + $0x2b4] sm:$0xf]  ;;  %v2670_v47 = vld [vmem:[%s3445_s14 + $0x2b8] sm:$0xf] }
 0x1d3   : > { %v1989_v37 = vmax.f32 %v1914_v26, 0.0  ;;  %1777 = vmatmul.bf16.gmra.mxu0 %v2607_v14  ;;  %v1828_v45 = vadd.f32 %v1827_v2, %v1739_v32  ;;  %v2639_v14 = vor.u32 %v3084_v59, %v2636_v60  ;;  %v3095_v59 = vld [vmem:[%s3445_s14 + $0x2d0] sm:$0xf0] }
 0x1d4   : > { %1866 = vmatmul.bf16.gmra.mxu1 %v2611_v16 }
 0x1d5   : > { %2962 = vmatmul.msk.bf16.gmra.mxu2 %vm1314_vm0, %v2615_v31  ;;  %v2019_v12 = vpack.c.bf16 %v1989_v37, %v1988_v23 }
 0x1d7   : > { %2115 = vmatmul.bf16.gmra.mxu3 %v2019_v12 }
 0x1d8   : > { %v1916_v38 = vpop.f32.mrf.mxu2  ;;  %v1740_v39 = vpop.f32.mrf.mxu0 }
 0x1d9   : > { %v1829_v41 = vpop.f32.mrf.mxu1  ;;  %v1741_v42 = vadd.f32 %v1740_v39, %v3634_v54  ;;  %v1917_v4 = vadd.f32 %v1916_v38, %v1828_v45  ;;  %v2662_v39 = vld [vmem:[%s3445_s14 + $0x2b0] sm:$0xf] }
 0x1da   : > { %v2664_v45 = vld [vmem:[%s3445_s14 + $0x2cc] sm:$0xf0] }
 0x1db   : > { %v1830_v5 = vadd.f32 %v1829_v41, %v1741_v42  ;;  %v1990_v54 = vmax.f32 %v1917_v4, 0.0  ;;  %v3094_v42 = vld [vmem:[%s3445_s14 + $0x2c8] sm:$0xf0] }
 0x1dc   : > { %v2663_v4 = vor.u32 %v3094_v42, %v2662_v39  ;;  %v2692_v39 = vld [vmem:[%s3445_s14 + $0x304] sm:$0xf0]  ;;  %v3102_v42 = vld [vmem:[%s3445_s14 + $0x308] sm:$0xf0] }
 0x1e0   : > { %v1918_v8 = vpop.f32.mrf.mxu2  ;;  %v1743_v26 = vpop.f32.mrf.mxu0 }
 0x1e1   : > { %v1919_v16 = vadd.f32 %v1918_v8, %v1830_v5  ;;  %v1832_v33 = vpop.f32.mrf.mxu1  ;;  %v1744_v37 = vadd.f32 %v1743_v26, %v3640_v0  ;;  %v2667_v5 = vor.u32 %v3091_v43, %v2664_v45 }
 0x1e3   : > { %v1991_v2 = vmax.f32 %v1919_v16, 0.0  ;;  %1782 = vmatmul.bf16.gmra.mxu0 %v2635_v9  ;;  %v1833_v41 = vadd.f32 %v1832_v33, %v1744_v37  ;;  %v2690_v37 = vld [vmem:[%s3445_s14 + $0x2e8] sm:$0xf] }
 0x1e4   : > { %1871 = vmatmul.bf16.gmra.mxu1 %v2639_v14  ;;  %v2671_v14 = vor.u32 %v3095_v59, %v2670_v47 }
 0x1e5   : > { %2963 = vmatmul.msk.bf16.gmra.mxu2 %vm1314_vm0, %v2643_v57  ;;  %v2020_v31 = vpack.c.bf16 %v1991_v2, %v1990_v54  ;;  %v1662_v57 = vadd.f32 %v3670_v46, %v3672_v49 }
 0x1e7   : > { %2120 = vmatmul.bf16.gmra.mxu3 %v2020_v31 }
 0x1e8   : > { %v1921_v23 = vpop.f32.mrf.mxu2  ;;  %v1745_v12 = vpop.f32.mrf.mxu0 }
 0x1e9   : > { %v1834_v38 = vpop.f32.mrf.mxu1  ;;  %v1746_v32 = vadd.f32 %v1745_v12, %v3651_v22  ;;  %v1922_v60 = vadd.f32 %v1921_v23, %v1833_v41  ;;  %v2698_v41 = vld [vmem:[%s3445_s14 + $0x2f0] sm:$0xf] }
 0x1eb   : > { %v1835_v61 = vadd.f32 %v1834_v38, %v1746_v32  ;;  %v1992_v16 = vmax.f32 %v1922_v60, 0.0  ;;  %v3101_v38 = vld [vmem:[%s3445_s14 + $0x300] sm:$0xf0]  ;;  %v3098_v32 = vld [vmem:[%s3445_s14 + $0x2ec] sm:$0xf] }
 0x1ec   : > { %v2691_v59 = vor.u32 %v3101_v38, %v2690_v37  ;;  %v2695_v60 = vor.u32 %v3098_v32, %v2692_v39 }
 0x1f0   : > { %v1923_v63 = vpop.f32.mrf.mxu2  ;;  %v1748_v9 = vpop.f32.mrf.mxu0 }
 0x1f1   : > { %v1924_v8 = vadd.f32 %v1923_v63, %v1835_v61  ;;  %v1837_v0 = vpop.f32.mrf.mxu1  ;;  %v1749_v54 = vadd.f32 %v1748_v9, %v3660_v34  ;;  %v2699_v34 = vor.u32 %v3102_v42, %v2698_v41  ;;  %v1667_v9 = vadd.f32 %v3689_v15, %v3691_v18 }
 0x1f3   : > { %v1993_v22 = vmax.f32 %v1924_v8, 0.0  ;;  %1787 = vmatmul.bf16.gmra.mxu0 %v2663_v4  ;;  %v1838_v12 = vadd.f32 %v1837_v0, %v1749_v54  ;;  %v3105_v54 = vld [vmem:[%s3445_s14 + $0x324] sm:$0xf] }
 0x1f4   : > { %1876 = vmatmul.bf16.gmra.mxu1 %v2667_v5 }
 0x1f5   : > { %2964 = vmatmul.msk.bf16.gmra.mxu2 %vm1314_vm0, %v2671_v14  ;;  %v2021_v26 = vpack.c.bf16 %v1993_v22, %v1992_v16 }
 0x1f7   : > { %2125 = vmatmul.bf16.gmra.mxu3 %v2021_v26  ;;  %v2718_v26 = vld [vmem:[%s3445_s14 + $0x320] sm:$0xf] }
 0x1f8   : > { %v1926_v33 = vpop.f32.mrf.mxu2  ;;  %v1750_v2 = vpop.f32.mrf.mxu0 }
 0x1f9   : > { %v1839_v31 = vpop.f32.mrf.mxu1  ;;  %v1751_v23 = vadd.f32 %v1750_v2, %v1662_v57  ;;  %v1927_v43 = vadd.f32 %v1926_v33, %v1838_v12  ;;  %v3108_v57 = vld [vmem:[%s3445_s14 + $0x338] sm:$0xf0]  ;;  %v2720_v2 = vld [vmem:[%s3445_s14 + $0x33c] sm:$0xf0] }
 0x1fa   : > { %v2719_v32 = vor.u32 %v3108_v57, %v2718_v26  ;;  %v2723_v39 = vor.u32 %v3105_v54, %v2720_v2 }
 0x1fb   : > { %v1840_v45 = vadd.f32 %v1839_v31, %v1751_v23  ;;  %v1994_v49 = vmax.f32 %v1927_v43, 0.0  ;;  %v2726_v31 = vld [vmem:[%s3445_s14 + $0x328] sm:$0xf]  ;;  %v3109_v23 = vld [vmem:[%s3445_s14 + $0x340] sm:$0xf0] }
 0x200   : > { %v1928_v47 = vpop.f32.mrf.mxu2  ;;  %v1753_v63 = vpop.f32.mrf.mxu0 }
 0x201   : > { %v1929_v61 = vadd.f32 %v1928_v47, %v1840_v45  ;;  %v1842_v46 = vpop.f32.mrf.mxu1  ;;  %v1754_v0 = vadd.f32 %v1753_v63, %v3679_v3  ;;  %v2727_v3 = vor.u32 %v3109_v23, %v2726_v31 }
 0x203   : > { %v1995_v4 = vmax.f32 %v1929_v61, 0.0  ;;  %1792 = vmatmul.bf16.gmra.mxu0 %v2691_v59  ;;  %v1843_v33 = vadd.f32 %v1842_v46, %v1754_v0  ;;  %v1672_v59 = vadd.f32 %v3705_v48, %v3707_v52  ;;  %v3116_v0 = vld [vmem:[%s3445_s14 + $0x378] sm:$0xf0] }
 0x204   : > { %1881 = vmatmul.bf16.gmra.mxu1 %v2695_v60 }
 0x205   : > { %v2022_v5 = vpack.c.bf16 %v1995_v4, %v1994_v49  ;;  %2965 = vmatmul.msk.bf16.gmra.mxu2 %vm1314_vm0, %v2699_v34  ;;  %v2746_v34 = vld [vmem:[%s3445_s14 + $0x358] sm:$0xf]  ;;  %v3115_v4 = vld [vmem:[%s3445_s14 + $0x370] sm:$0xf0] }
 0x206   : > { %v2747_v26 = vor.u32 %v3115_v4, %v2746_v34 }
 0x207   : > { %2130 = vmatmul.bf16.gmra.mxu3 %v2022_v5  ;;  %v3112_v5 = vld [vmem:[%s3445_s14 + $0x35c] sm:$0xf] }
 0x208   : > { %v1931_v8 = vpop.f32.mrf.mxu2  ;;  %v1755_v14 = vpop.f32.mrf.mxu0 }
 0x209   : > { %v1844_v16 = vpop.f32.mrf.mxu1  ;;  %v1756_v22 = vadd.f32 %v1755_v14, %v1667_v9  ;;  %v1932_v37 = vadd.f32 %v1931_v8, %v1843_v33  ;;  %v2748_v8 = vld [vmem:[%s3445_s14 + $0x374] sm:$0xf0]  ;;  %v2754_v9 = vld [vmem:[%s3445_s14 + $0x360] sm:$0xf]  ;;  %s218_s14 = sand.u32 1, %s3273_s19  }
 0x20a   : > { %v2751_v33 = vor.u32 %v3112_v5, %v2748_v8  ;;  %v2755_v52 = vor.u32 %v3116_v0, %v2754_v9  ;;  %s2305_s26 = sshll.u32 %s218_s14, 8  ;;  %s2224_s12 = scalar_lea.sflag [#allocation3], %s218_s14 }
 0x20b   : > { %v1845_v12 = vadd.f32 %v1844_v16, %v1756_v22  ;;  %v1996_v18 = vmax.f32 %v1932_v37, 0.0  ;;  %v1677_v37 = vadd.f32 %v3722_v19, %v3724_v24  ;;  %v1682_v19 = vadd.f32 %v3737_v53, %v3739_v58  ;;  %s3940_s6 = scalar_lea.vmem [#allocation2], %s2305_s26 }
 0x20c   : > { %v1687_v58 = vadd.f32 %v3755_v27, %v3757_v30  ;;  %s2236_s11 = sshll.u32 %s3940_s6, 4  ;;  %s2237_s11 = int_to_ptr.vmem [resolvable:$true] %s2236_s11 }
 0x210   : > { %v1933_v38 = vpop.f32.mrf.mxu2  ;;  %v1758_v42 = vpop.f32.mrf.mxu0 }
 0x211   : > { %v1934_v41 = vadd.f32 %v1933_v38, %v1845_v12  ;;  %v1847_v15 = vpop.f32.mrf.mxu1  ;;  %v1759_v60 = vadd.f32 %v1758_v42, %v3695_v35 }
 0x213   : > { %v1997_v43 = vmax.f32 %v1934_v41, 0.0  ;;  %1797 = vmatmul.bf16.gmra.mxu0 %v2719_v32  ;;  %v1848_v49 = vadd.f32 %v1847_v15, %v1759_v60 }
 0x214   : > { %1886 = vmatmul.bf16.gmra.mxu1 %v2723_v39 }
 0x215   : > { %v2023_v45 = vpack.c.bf16 %v1997_v43, %v1996_v18  ;;  %2966 = vmatmul.msk.bf16.gmra.mxu2 %vm1314_vm0, %v2727_v3 }
 0x217   : > { %2135 = vmatmul.bf16.gmra.mxu3 %v2023_v45 }
 0x218   : > { %v1936_v47 = vpop.f32.mrf.mxu2  ;;  %v1760_v61 = vpop.f32.mrf.mxu0 }
 0x219   : > { %v1849_v63 = vpop.f32.mrf.mxu1  ;;  %v1761_v46 = vadd.f32 %v1760_v61, %v1672_v59  ;;  %v1937_v14 = vadd.f32 %v1936_v47, %v1848_v49 }
 0x21b   : > { %v1850_v16 = vadd.f32 %v1849_v63, %v1761_v46  ;;  %v1998_v35 = vmax.f32 %v1937_v14, 0.0  ;;  %v3926_v14 = vpop.f32.mrf.mxu3 }
 0x220   : > { %v1938_v22 = vpop.f32.mrf.mxu2  ;;  %v1763_v54 = vpop.f32.mrf.mxu0 }
 0x221   : > { %v1939_v57 = vadd.f32 %v1938_v22, %v1850_v16  ;;  %v1852_v48 = vpop.f32.mrf.mxu1  ;;  %v1764_v12 = vadd.f32 %v1763_v54, %v3714_v7 }
 0x223   : > { %v1999_v2 = vmax.f32 %v1939_v57, 0.0  ;;  %1802 = vmatmul.bf16.gmra.mxu0 %v2747_v26  ;;  %v1853_v41 = vadd.f32 %v1852_v48, %v1764_v12 }
 0x224   : > { %1891 = vmatmul.bf16.gmra.mxu1 %v2751_v33 }
 0x225   : > { %v2024_v31 = vpack.c.bf16 %v1999_v2, %v1998_v35  ;;  %2967 = vmatmul.msk.bf16.gmra.mxu2 %vm1314_vm0, %v2755_v52 }
 0x227   : > { %2140 = vmatmul.bf16.gmra.mxu3 %v2024_v31 }
 0x228   : > { %v1941_v23 = vpop.f32.mrf.mxu2  ;;  %v1765_v38 = vpop.f32.mrf.mxu0 }
 0x229   : > { %v1854_v32 = vpop.f32.mrf.mxu1  ;;  %v1766_v39 = vadd.f32 %v1765_v38, %v1677_v37  ;;  %v1942_v42 = vadd.f32 %v1941_v23, %v1853_v41 }
 0x22b   : > { %v1855_v15 = vadd.f32 %v1854_v32, %v1766_v39  ;;  %v2000_v47 = vmax.f32 %v1942_v42, 0.0 }
 0x230   : > { %v1943_v3 = vpop.f32.mrf.mxu2  ;;  %v1768_v43 = vpop.f32.mrf.mxu0 }
 0x231   : > { %v1944_v18 = vadd.f32 %v1943_v3, %v1855_v15  ;;  %v1857_v45 = vpop.f32.mrf.mxu1  ;;  %v1769_v7 = vadd.f32 %v1768_v43, %v3729_v40  ;;  %v3934_v40 = vld [vmem:[%s4061_s4] ss:$0 sm:$0xff]  ;;  %v1692_v15 = vadd.f32 %v3770_v1, %v3772_v6 }
 0x233   : > { %v2001_v59 = vmax.f32 %v1944_v18, 0.0  ;;  %v1858_v34 = vadd.f32 %v1857_v45, %v1769_v7 }
 0x235   : > { %v2025_v60 = vpack.c.bf16 %v2001_v59, %v2000_v47 }
 0x237   : > { %2145 = vmatmul.bf16.gmra.mxu3 %v2025_v60 }
 0x238   : > { %v1946_v61 = vpop.f32.mrf.mxu2  ;;  %v1770_v24 = vpop.f32.mrf.mxu0 }
 0x239   : > { %v1859_v63 = vpop.f32.mrf.mxu1  ;;  %v1771_v46 = vadd.f32 %v1770_v24, %v1682_v19  ;;  %v1947_v49 = vadd.f32 %v1946_v61, %v1858_v34 }
 0x23b   : > { %v1860_v4 = vadd.f32 %v1859_v63, %v1771_v46  ;;  %v2002_v16 = vmax.f32 %v1947_v49, 0.0 }
 0x240   : > { %v1948_v5 = vpop.f32.mrf.mxu2  ;;  %v1773_v9 = vpop.f32.mrf.mxu0 }
 0x241   : > { %v1949_v8 = vadd.f32 %v1948_v5, %v1860_v4  ;;  %v1862_v0 = vpop.f32.mrf.mxu1  ;;  %v1774_v33 = vadd.f32 %v1773_v9, %v3747_v11  ;;  %v1697_v5 = vadd.f32 %v3788_v44, %v3790_v51 }
 0x243   : > { %v2003_v22 = vmax.f32 %v1949_v8, 0.0  ;;  %v1863_v2 = vadd.f32 %v1862_v0, %v1774_v33 }
 0x245   : > { %v2026_v26 = vpack.c.bf16 %v2003_v22, %v2002_v16 }
 0x247   : > { %2150 = vmatmul.bf16.gmra.mxu3 %v2026_v26 }
 0x248   : > { %v1951_v53 = vpop.f32.mrf.mxu2  ;;  %v1775_v57 = vpop.f32.mrf.mxu0 }
 0x249   : > { %v1864_v54 = vpop.f32.mrf.mxu1  ;;  %v1776_v52 = vadd.f32 %v1775_v57, %v1687_v58  ;;  %v1952_v31 = vadd.f32 %v1951_v53, %v1863_v2 }
 0x24a   : > { %v2111_v48 = vpop.f32.mrf.mxu3 }
 0x24b   : > { %v2112_v35 = vadd.f32 %v3934_v40, %v2111_v48  ;;  %v1865_v23 = vadd.f32 %v1864_v54, %v1776_v52  ;;  %v2004_v11 = vmax.f32 %v1952_v31, 0.0 }
 0x24d   : > { %2191 = vst [vmem:[%s3940_s6] sm:$0xff] %v2112_v35 }
 0x250   : > { %v1953_v37 = vpop.f32.mrf.mxu2  ;;  %v1778_v38 = vpop.f32.mrf.mxu0 }
 0x251   : > { %v1954_v12 = vadd.f32 %v1953_v37, %v1865_v23  ;;  %v1867_v27 = vpop.f32.mrf.mxu1  ;;  %v1779_v3 = vadd.f32 %v1778_v38, %v3762_v50  ;;  %v1702_v23 = vadd.f32 %v3803_v28, %v3805_v36 }
 0x252   : > { %v2113_v30 = vpop.f32.mrf.mxu3 }
 0x253   : > { %v2005_v32 = vmax.f32 %v1954_v12, 0.0  ;;  %v2114_v39 = vadd.f32 %v3934_v40, %v2113_v30  ;;  %v1868_v60 = vadd.f32 %v1867_v27, %v1779_v3 }
 0x255   : > { %v2027_v41 = vpack.c.bf16 %v2005_v32, %v2004_v11  ;;  %2192 = vst [vmem:[%s3940_s6 + $0x8] sm:$0xff] %v2114_v39 }
 0x257   : > { %2155 = vmatmul.bf16.gmra.mxu3 %v2027_v41 }
 0x258   : > { %v1956_v42 = vpop.f32.mrf.mxu2  ;;  %v1780_v18 = vpop.f32.mrf.mxu0 }
 0x259   : > { %v1869_v43 = vpop.f32.mrf.mxu1  ;;  %v1781_v47 = vadd.f32 %v1780_v18, %v1692_v15  ;;  %v1957_v61 = vadd.f32 %v1956_v42, %v1868_v60 }
 0x25a   : > { %v2116_v45 = vpop.f32.mrf.mxu3 }
 0x25b   : > { %v2117_v59 = vadd.f32 %v3934_v40, %v2116_v45  ;;  %v1870_v19 = vadd.f32 %v1869_v43, %v1781_v47  ;;  %v2006_v1 = vmax.f32 %v1957_v61, 0.0 }
 0x25d   : > { %2193 = vst [vmem:[%s3940_s6 + $0x10] sm:$0xff] %v2117_v59  ;;  %v1707_v59 = vadd.f32 %v3821_v17, %v3823_v25 }
 0x260   : > { %v1958_v7 = vpop.f32.mrf.mxu2  ;;  %v1783_v63 = vpop.f32.mrf.mxu0 }
 0x261   : > { %v1959_v24 = vadd.f32 %v1958_v7, %v1870_v19  ;;  %v1872_v46 = vpop.f32.mrf.mxu1  ;;  %v1784_v8 = vadd.f32 %v1783_v63, %v3780_v29 }
 0x262   : > { %v2118_v34 = vpop.f32.mrf.mxu3 }
 0x263   : > { %v2007_v6 = vmax.f32 %v1959_v24, 0.0  ;;  %v2119_v50 = vadd.f32 %v3934_v40, %v2118_v34  ;;  %v1873_v53 = vadd.f32 %v1872_v46, %v1784_v8 }
 0x265   : > { %v2028_v49 = vpack.c.bf16 %v2007_v6, %v2006_v1  ;;  %2194 = vst [vmem:[%s3940_s6 + $0x18] sm:$0xff] %v2119_v50 }
 0x267   : > { %2160 = vmatmul.bf16.gmra.mxu3 %v2028_v49 }
 0x268   : > { %v1961_v4 = vpop.f32.mrf.mxu2  ;;  %v1785_v9 = vpop.f32.mrf.mxu0 }
 0x269   : > { %v1874_v0 = vpop.f32.mrf.mxu1  ;;  %v1786_v22 = vadd.f32 %v1785_v9, %v1697_v5  ;;  %v1962_v58 = vadd.f32 %v1961_v4, %v1873_v53 }
 0x26a   : > { %v2121_v16 = vpop.f32.mrf.mxu3 }
 0x26b   : > { %v2122_v26 = vadd.f32 %v3934_v40, %v2121_v16  ;;  %v1875_v33 = vadd.f32 %v1874_v0, %v1786_v22  ;;  %v2008_v44 = vmax.f32 %v1962_v58, 0.0  ;;  %v1712_v0 = vadd.f32 %v3836_v13, %v3838_v20 }
 0x26d   : > { %2195 = vst [vmem:[%s3940_s6 + $0x20] sm:$0xff] %v2122_v26 }
 0x270   : > { %v1963_v57 = vpop.f32.mrf.mxu2  ;;  %v1788_v48 = vpop.f32.mrf.mxu0 }
 0x271   : > { %v1964_v54 = vadd.f32 %v1963_v57, %v1875_v33  ;;  %v1877_v52 = vpop.f32.mrf.mxu1  ;;  %v1789_v37 = vadd.f32 %v1788_v48, %v3795_v10 }
 0x272   : > { %v2123_v35 = vpop.f32.mrf.mxu3 }
 0x273   : > { %v2009_v51 = vmax.f32 %v1964_v54, 0.0  ;;  %v2124_v29 = vadd.f32 %v3934_v40, %v2123_v35  ;;  %v1878_v32 = vadd.f32 %v1877_v52, %v1789_v37 }
 0x275   : > { %v2029_v2 = vpack.c.bf16 %v2009_v51, %v2008_v44  ;;  %2196 = vst [vmem:[%s3940_s6 + $0x28] sm:$0xff] %v2124_v29 }
 0x277   : > { %2165 = vmatmul.bf16.gmra.mxu3 %v2029_v2 }
 0x278   : > { %v1966_v31 = vpop.f32.mrf.mxu2  ;;  %v1790_v12 = vpop.f32.mrf.mxu0 }
 0x279   : > { %v1879_v38 = vpop.f32.mrf.mxu1  ;;  %v1791_v30 = vadd.f32 %v1790_v12, %v1702_v23  ;;  %v1967_v39 = vadd.f32 %v1966_v31, %v1878_v32  ;;  %v1717_v23 = vadd.f32 %v3926_v14, %v3851_v21 }
 0x27a   : > { %v2126_v27 = vpop.f32.mrf.mxu3 }
 0x27b   : > { %v2127_v11 = vadd.f32 %v3934_v40, %v2126_v27  ;;  %v1880_v41 = vadd.f32 %v1879_v38, %v1791_v30  ;;  %v2010_v28 = vmax.f32 %v1967_v39, 0.0 }
 0x27d   : > { %2197 = vst [vmem:[%s3940_s6 + $0x30] sm:$0xff] %v2127_v11 }
 0x280   : > { %v1968_v42 = vpop.f32.mrf.mxu2  ;;  %v1793_v3 = vpop.f32.mrf.mxu0 }
 0x281   : > { %v1969_v15 = vadd.f32 %v1968_v42, %v1880_v41  ;;  %v1882_v18 = vpop.f32.mrf.mxu1  ;;  %v1794_v60 = vadd.f32 %v1793_v3, %v3813_v62 }
 0x282   : > { %v2128_v43 = vpop.f32.mrf.mxu3 }
 0x283   : > { %v2011_v36 = vmax.f32 %v1969_v15, 0.0  ;;  %v2129_v10 = vadd.f32 %v3934_v40, %v2128_v43  ;;  %v1883_v46 = vadd.f32 %v1882_v18, %v1794_v60 }
 0x285   : > { %v2030_v45 = vpack.c.bf16 %v2011_v36, %v2010_v28  ;;  %2198 = vst [vmem:[%s3940_s6 + $0x38] sm:$0xff] %v2129_v10 }
 0x287   : > { %2170 = vmatmul.bf16.gmra.mxu3 %v2030_v45 }
 0x288   : > { %v1971_v47 = vpop.f32.mrf.mxu2  ;;  %v1795_v61 = vpop.f32.mrf.mxu0 }
 0x289   : > { %v1884_v19 = vpop.f32.mrf.mxu1  ;;  %v1796_v24 = vadd.f32 %v1795_v61, %v1707_v59  ;;  %v1972_v34 = vadd.f32 %v1971_v47, %v1883_v46 }
 0x28a   : > { %v2131_v7 = vpop.f32.mrf.mxu3 }
 0x28b   : > { %v2132_v63 = vadd.f32 %v3934_v40, %v2131_v7  ;;  %v1885_v1 = vadd.f32 %v1884_v19, %v1796_v24  ;;  %v2012_v17 = vmax.f32 %v1972_v34, 0.0 }
 0x28d   : > { %2199 = vst [vmem:[%s3940_s6 + $0x40] sm:$0xff] %v2132_v63 }
 0x290   : > { %v1973_v6 = vpop.f32.mrf.mxu2  ;;  %v1798_v49 = vpop.f32.mrf.mxu0 }
 0x291   : > { %v1974_v50 = vadd.f32 %v1973_v6, %v1885_v1  ;;  %v1887_v4 = vpop.f32.mrf.mxu1  ;;  %v1799_v16 = vadd.f32 %v1798_v49, %v3828_v56 }
 0x292   : > { %v2133_v5 = vpop.f32.mrf.mxu3 }
 0x293   : > { %v2013_v25 = vmax.f32 %v1974_v50, 0.0  ;;  %v2134_v62 = vadd.f32 %v3934_v40, %v2133_v5  ;;  %v1888_v57 = vadd.f32 %v1887_v4, %v1799_v16 }
 0x295   : > { %v2031_v8 = vpack.c.bf16 %v2013_v25, %v2012_v17  ;;  %2200 = vst [vmem:[%s3940_s6 + $0x48] sm:$0xff] %v2134_v62 }
 0x297   : > { %2175 = vmatmul.bf16.gmra.mxu3 %v2031_v8 }
 0x298   : > { %v1976_v9 = vpop.f32.mrf.mxu2  ;;  %v1800_v22 = vpop.f32.mrf.mxu0 }
 0x299   : > { %v1889_v26 = vpop.f32.mrf.mxu1  ;;  %v1801_v58 = vadd.f32 %v1800_v22, %v1712_v0  ;;  %v1977_v54 = vadd.f32 %v1976_v9, %v1888_v57 }
 0x29a   : > { %v2136_v53 = vpop.f32.mrf.mxu3 }
 0x29b   : > { %v2137_v33 = vadd.f32 %v3934_v40, %v2136_v53  ;;  %v1890_v48 = vadd.f32 %v1889_v26, %v1801_v58  ;;  %v2014_v29 = vmax.f32 %v1977_v54, 0.0 }
 0x29d   : > { %2201 = vst [vmem:[%s3940_s6 + $0x50] sm:$0xff] %v2137_v33 }
 0x2a0   : > { %v1978_v52 = vpop.f32.mrf.mxu2  ;;  %v1803_v44 = vpop.f32.mrf.mxu0 }
 0x2a1   : > { %v1979_v35 = vadd.f32 %v1978_v52, %v1890_v48  ;;  %v1892_v20 = vpop.f32.mrf.mxu1  ;;  %v1804_v37 = vadd.f32 %v1803_v44, %v3843_v55 }
 0x2a2   : > { %v2138_v51 = vpop.f32.mrf.mxu3 }
 0x2a3   : > { %v2015_v13 = vmax.f32 %v1979_v35, 0.0  ;;  %v2139_v56 = vadd.f32 %v3934_v40, %v2138_v51  ;;  %v1893_v11 = vadd.f32 %v1892_v20, %v1804_v37 }
 0x2a5   : > { %v2032_v2 = vpack.c.bf16 %v2015_v13, %v2014_v29  ;;  %2202 = vst [vmem:[%s3940_s6 + $0x58] sm:$0xff] %v2139_v56 }
 0x2a7   : > { %2180 = vmatmul.bf16.gmra.mxu3 %v2032_v2 }
 0x2a8   : > { %v1981_v31 = vpop.f32.mrf.mxu2  ;;  %v1805_v12 = vpop.f32.mrf.mxu0 }
 0x2a9   : > { %v1806_v27 = vadd.f32 %v1805_v12, %v1717_v23  ;;  %v1894_v32 = vpop.f32.mrf.mxu1  ;;  %v1982_v39 = vadd.f32 %v1981_v31, %v1893_v11 }
 0x2aa   : > { %v2141_v38 = vpop.f32.mrf.mxu3 }
 0x2ab   : > { %v2142_v30 = vadd.f32 %v3934_v40, %v2141_v38  ;;  %v1895_v41 = vadd.f32 %v1894_v32, %v1806_v27  ;;  %v2016_v21 = vmax.f32 %v1982_v39, 0.0 }
 0x2ad   : > { %2203 = vst [vmem:[%s3940_s6 + $0x60] sm:$0xff] %v2142_v30 }
 0x2b0   : > { %v1983_v42 = vpop.f32.mrf.mxu2 }
 0x2b1   : > { %v1984_v15 = vadd.f32 %v1983_v42, %v1895_v41 }
 0x2b2   : > { %v2143_v3 = vpop.f32.mrf.mxu3 }
 0x2b3   : > { %v2017_v14 = vmax.f32 %v1984_v15, 0.0  ;;  %v2144_v55 = vadd.f32 %v3934_v40, %v2143_v3 }
 0x2b5   : > { %v2033_v18 = vpack.c.bf16 %v2017_v14, %v2016_v21  ;;  %2204 = vst [vmem:[%s3940_s6 + $0x68] sm:$0xff] %v2144_v55 }
 0x2b7   : > { %2185 = vmatmul.bf16.gmra.mxu3 %v2033_v18 }
 0x2ba   : > { %v2146_v43 = vpop.f32.mrf.mxu3 }
 0x2bb   : > { %v2147_v28 = vadd.f32 %v3934_v40, %v2146_v43 }
 0x2bd   : > { %2205 = vst [vmem:[%s3940_s6 + $0x70] sm:$0xff] %v2147_v28 }
 0x2c2   : > { %v2148_v36 = vpop.f32.mrf.mxu3 }
 0x2c3   : > { %v2149_v10 = vadd.f32 %v3934_v40, %v2148_v36 }
 0x2c5   : > { %2206 = vst [vmem:[%s3940_s6 + $0x78] sm:$0xff] %v2149_v10 }
 0x2ca   : > { %v2151_v45 = vpop.f32.mrf.mxu3 }
 0x2cb   : > { %v2152_v47 = vadd.f32 %v3934_v40, %v2151_v45 }
 0x2cd   : > { %2207 = vst [vmem:[%s3940_s6 + $0x80] sm:$0xff] %v2152_v47 }
 0x2d2   : > { %v2153_v59 = vpop.f32.mrf.mxu3 }
 0x2d3   : > { %v2154_v60 = vadd.f32 %v3934_v40, %v2153_v59 }
 0x2d5   : > { %2208 = vst [vmem:[%s3940_s6 + $0x88] sm:$0xff] %v2154_v60 }
 0x2da   : > { %v2156_v61 = vpop.f32.mrf.mxu3 }
 0x2db   : > { %v2157_v19 = vadd.f32 %v3934_v40, %v2156_v61 }
 0x2dd   : > { %2209 = vst [vmem:[%s3940_s6 + $0x90] sm:$0xff] %v2157_v19 }
 0x2e2   : > { %v2158_v7 = vpop.f32.mrf.mxu3 }
 0x2e3   : > { %v2159_v24 = vadd.f32 %v3934_v40, %v2158_v7 }
 0x2e5   : > { %2210 = vst [vmem:[%s3940_s6 + $0x98] sm:$0xff] %v2159_v24 }
 0x2ea   : > { %v2161_v63 = vpop.f32.mrf.mxu3 }
 0x2eb   : > { %v2162_v46 = vadd.f32 %v3934_v40, %v2161_v63 }
 0x2ed   : > { %2211 = vst [vmem:[%s3940_s6 + $0xa0] sm:$0xff] %v2162_v46 }
 0x2f2   : > { %v2163_v34 = vpop.f32.mrf.mxu3 }
 0x2f3   : > { %v2164_v1 = vadd.f32 %v3934_v40, %v2163_v34 }
 0x2f5   : > { %2212 = vst [vmem:[%s3940_s6 + $0xa8] sm:$0xff] %v2164_v1 }
 0x2fa   : > { %v2166_v6 = vpop.f32.mrf.mxu3 }
 0x2fb   : > { %v2167_v50 = vadd.f32 %v3934_v40, %v2166_v6 }
 0x2fd   : > { %2213 = vst [vmem:[%s3940_s6 + $0xb0] sm:$0xff] %v2167_v50 }
 0x302   : > { %v2168_v49 = vpop.f32.mrf.mxu3 }
 0x303   : > { %v2169_v4 = vadd.f32 %v3934_v40, %v2168_v49 }
 0x305   : > { %2214 = vst [vmem:[%s3940_s6 + $0xb8] sm:$0xff] %v2169_v4 }
 0x30a   : > { %v2171_v5 = vpop.f32.mrf.mxu3 }
 0x30b   : > { %v2172_v17 = vadd.f32 %v3934_v40, %v2171_v5 }
 0x30d   : > { %2215 = vst [vmem:[%s3940_s6 + $0xc0] sm:$0xff] %v2172_v17 }
 0x312   : > { %v2173_v25 = vpop.f32.mrf.mxu3 }
 0x313   : > { %v2174_v62 = vadd.f32 %v3934_v40, %v2173_v25 }
 0x315   : > { %2216 = vst [vmem:[%s3940_s6 + $0xc8] sm:$0xff] %v2174_v62 }
 0x31a   : > { %v2176_v8 = vpop.f32.mrf.mxu3 }
 0x31b   : > { %v2177_v9 = vadd.f32 %v3934_v40, %v2176_v8 }
 0x31d   : > { %2217 = vst [vmem:[%s3940_s6 + $0xd0] sm:$0xff] %v2177_v9 }
 0x322   : > { %v2178_v0 = vpop.f32.mrf.mxu3 }
 0x323   : > { %v2179_v16 = vadd.f32 %v3934_v40, %v2178_v0 }
 0x325   : > { %2218 = vst [vmem:[%s3940_s6 + $0xd8] sm:$0xff] %v2179_v16 }
 0x32a   : > { %v2181_v22 = vpop.f32.mrf.mxu3 }
 0x32b   : > { %v2182_v26 = vadd.f32 %v3934_v40, %v2181_v22 }
 0x32d   : > { %2219 = vst [vmem:[%s3940_s6 + $0xe0] sm:$0xff] %v2182_v26 }
 0x332   : > { %v2183_v53 = vpop.f32.mrf.mxu3 }
 0x333   : > { %v2184_v58 = vadd.f32 %v3934_v40, %v2183_v53 }
 0x335   : > { %2220 = vst [vmem:[%s3940_s6 + $0xe8] sm:$0xff] %v2184_v58 }
 0x33a   : > { %v2186_v33 = vpop.f32.mrf.mxu3 }
 0x33b   : > { %v2187_v57 = vadd.f32 %v3934_v40, %v2186_v33 }
 0x33d   : > { %2221 = vst [vmem:[%s3940_s6 + $0xf0] sm:$0xff] %v2187_v57 }
 0x342   : > { %v2188_v54 = vpop.f32.mrf.mxu3 }
 0x343   : > { %v2189_v48 = vadd.f32 %v3934_v40, %v2188_v54 }
 0x345   : > { %2222 = vst [vmem:[%s3940_s6 + $0xf8] sm:$0xff] %v2189_v48 }
 0x346   : > { %3246 = shalt.err (!%p3243_p3)
}
 0x347   : > { %s3283_s14 = smov 128   ;;  %s3284_s30 = smov 8  }
 0x348   : > { %3176 = dma.vmem_to_hbm [thread:$0]  (%p3353_p5), %s2237_s11, 4096, %s2239_s13, %s2224_s12, %s3283_s14, %s3283_s14, %s3284_s30  }
 0x349 PF: > { %p3182_p4 = scmp.ge.s32.totalorder %s3281_s21, 2  ;;  %s2253_s6 = sand.u32 1, %s3269_s18  }
 0x34a   : > { %s2254_s7 = scalar_lea.sflag [#allocation3], %s2253_s6 }
 0x34b   : > { %p3179_p7 = pnand %p3182_p4, %p3357_p6 }
 0x34d   : > { %p3180_p8 = pneg %p3179_p7 }
 0x34f   : > { %3264 = dma.done.wait (%p3180_p8), %s2254_s7, 4096  }
 0x350   : > { %3266 = vsyncadd (%p3180_p8), %s2254_s7, 4294963200  ;;  %p15_p9 = scmp.ge.s32.totalorder %s3340_s24, 4   ;;  %s4065_s18 = smov %s3273_s19 }
 0x351   : > { %s4066_s19 = smov %s3277_s20  ;;  %s4067_s20 = smov %s3351_s27 }
 0x352   : > { %s4068_s21 = smov %s3340_s24  ;;  %17 = sbr.rel (!%p15_p9) target bundleno = 3 (0x3), region = 75 }
 0x357   :  { %2260 = vsyncpa [#allocation3], 1 }
 0x358   :  { %2262 = vsyncpa [#allocation3 + $0x1], 1 }

</bundles_post_ra>
